<compile_context>
chip_gen: v6e
topology: v6e:2x2x1
jax: 0.10.0
libtpu: 0.0.40
codegen_flags: <defaults>
</compile_context>

<pallas_src>
import math
from functools import partial

import jax
import jax.numpy as jnp
import numpy as np
from jax.experimental import pallas as pl
from jax.experimental.pallas import tpu as pltpu

EPS = 1e-5  # nn.LayerNorm default


def _layer_norm(x, gamma, beta):
    mean = jnp.mean(x, axis=-1, keepdims=True)
    var = jnp.mean((x - mean) ** 2, axis=-1, keepdims=True)
    return (x - mean) * jax.lax.rsqrt(var + EPS) * gamma + beta


def _softmax(x):
    m = jnp.max(x, axis=-1, keepdims=True)
    e = jnp.exp(x - m)
    # EUP approximate reciprocal instead of a VALU divide.
    return e * pl.reciprocal(jnp.sum(e, axis=-1, keepdims=True), approx=True)


def decoder_kernel(num_heads, attn_size,
                   emb_ref, pos_ref, kc_ref, vc_ref,
                   wqkv_ref, wproj_ref,
                   w1_ref, b1_ref, w2_ref, b2_ref,
                   ln_g_ref, ln_b_ref, out_ref):
    B, S, E = out_ref.shape
    H, A = num_heads, attn_size
    S_enc = kc_ref.shape[2]
    N = B * S          # batch folded onto sublanes
    BH = B * H         # (batch, head) pairs batched together

    # embedding + positional encoding
    x = (emb_ref[...] + pos_ref[...]).reshape(N, E)                     # (B*S, E)

    # ---- fused Q/K/V projection: ONE (B*S,E)@(E,3E) MXU matmul ----------
    # wqkv columns grouped per head: [Q_h | K_h | V_h] blocks of width A.
    qkv = jnp.dot(x, wqkv_ref[...], preferred_element_type=jnp.float32)  # (N, 3E)
    # split heads: (B,S,H,3A) -> (B,H,S,3A) -> (B*H, S, 3A)
    qkvh = qkv.reshape(B, S, H, 3 * A).transpose(0, 2, 1, 3).reshape(BH, S, 3 * A)
    qh = qkvh[:, :, :A]                                                  # (BH, S, A)
    kh = qkvh[:, :, A:2 * A]
    vh = qkvh[:, :, 2 * A:]
    # TODO(synk): nn.Dropout(0.05) on Q/K/V treated as identity (eval mode).

    inv_scale_self = 1.0 / math.sqrt(E)        # AttentionJES: dk = embedding size
    inv_scale_cross = 1.0 / math.sqrt(S_enc)   # qvk_project: sqrt(K.shape[1]) = sqrt(S_enc)

    # ---- causal self-attention, all (batch, head) pairs batched ----------
    row = jax.lax.broadcasted_iota(jnp.int32, (S, S), 0)
    col = jax.lax.broadcasted_iota(jnp.int32, (S, S), 1)
    causal = row >= col                                                  # shared by all heads
    s = jnp.einsum('nqa,nka->nqk', qh * inv_scale_self, kh,
                   preferred_element_type=jnp.float32)                  # (BH, S, S)
    s = jnp.where(causal[None], s, -1e30)
    p = _softmax(s)
    o = jnp.einsum('nqk,nka->nqa', p, vh,
                   preferred_element_type=jnp.float32)                  # (BH, S, A)
    # head-concat (transpose/reshape) + output projection in one 2-D matmul;
    # the head reduction rides the MXU accumulator of (B*S,E)@(E,E).
    o_flat = o.reshape(B, H, S, A).transpose(0, 2, 1, 3).reshape(N, E)
    attention = jnp.dot(o_flat, wproj_ref[...], preferred_element_type=jnp.float32)
    x1 = _layer_norm(x + attention, ln_g_ref[0:1], ln_b_ref[0:1])        # _input_layer_norm

    # ---- encoder-decoder cross attention (no mask), narrow V kept as-is ----
    kc = kc_ref[...].reshape(BH, S_enc, A)
    vc = vc_ref[...].reshape(BH, S_enc, A)
    sc = jnp.einsum('nqa,nka->nqk', qh * inv_scale_cross, kc,
                    preferred_element_type=jnp.float32)                 # (BH, S, S_enc)
    pc = _softmax(sc)
    oc = jnp.einsum('nqk,nka->nqa', pc, vc,
                    preferred_element_type=jnp.float32)                 # (BH, S, A)
    cross_cat = oc.reshape(B, H, S, A).transpose(0, 2, 1, 3).reshape(N, E)
    final_attn = _layer_norm(cross_cat + x1, ln_g_ref[1:2], ln_b_ref[1:2])  # _encoder_decoder_layer_norm

    # ---- FeedForward: LN(x + relu(W2 @ (W1 @ x + b1) + b2)) --------------
    hidden = jnp.dot(final_attn, w1_ref[...],
                     preferred_element_type=jnp.float32) + b1_ref[...]
    ff = jnp.maximum(
        jnp.dot(hidden, w2_ref[...], preferred_element_type=jnp.float32) + b2_ref[...],
        0.0)
    decoded = _layer_norm(final_attn + ff, ln_g_ref[2:3], ln_b_ref[2:3])    # FeedForward._norm_layer

    out = _layer_norm(final_attn + decoded, ln_g_ref[3:4], ln_b_ref[3:4])   # _output_layer_norm
    out_ref[...] = out.reshape(B, S, E)


def prepare_params(raw, attention_size):
    """One-time parameter re-layout (kept OFF the per-call path, per review)."""
    E = raw['wq'].shape[0]
    A = attention_size
    H = E // A
    wq = raw['wq'].reshape(E, H, A)
    wk = raw['wk'].reshape(E, H, A)
    wv = raw['wv'].reshape(E, H, A)
    # Fused QKV weight, columns grouped per head h as [Q_h | K_h | V_h].
    wqkv = jnp.concatenate([wq, wk, wv], axis=2).reshape(E, 3 * E)
    p = dict(raw)
    p['wqkv'] = jax.block_until_ready(wqkv)
    return p


def transformer_decoder(emb, pos, k_cross, v_cross, p):
    B, S, E = emb.shape
    H, A = k_cross.shape[1], k_cross.shape[3]

    def full_spec(shape):
        nd = len(shape)
        return pl.BlockSpec(tuple(shape), lambda i, _nd=nd: (0,) * _nd)

    operands = (emb, pos, k_cross, v_cross,
                p['wqkv'], p['wproj'],
                p['w1'], p['b1'], p['w2'], p['b2'],
                p['ln_gamma'], p['ln_beta'])

    # Single grid step with B folded into the matmuls: best for single-TC
    # v5e/v6e and the review-sanctioned fallback for v7x.  Everything resident
    # in VMEM (<100 KiB), so no tiling / Buffered tuning is warranted.
    return pl.pallas_call(
        partial(decoder_kernel, H, A),
        out_shape=jax.ShapeDtypeStruct((B, S, E), jnp.float32),
        grid=(1,),
        in_specs=[full_spec(o.shape) for o in operands],
        out_specs=pl.BlockSpec((B, S, E), lambda i: (0, 0, 0)),
        compiler_params=pltpu.CompilerParams(dimension_semantics=("arbitrary",)),
    )(*operands)


def ref_forward(emb, pos, kc, vc, p):
    """Pure-JAX reference (same math as the PyTorch module, eval mode).

    Uses Precision.HIGHEST so the comparison is against exact-f32 math rather
    than XLA's default bf16 MXU passes.
    """
    hi = jax.lax.Precision.HIGHEST
    B, S, E = emb.shape
    H = kc.shape[1]
    A = E // H
    S_enc = kc.shape[2]
    x = emb + pos[None]
    Q = jnp.einsum('bse,ef->bsf', x, p['wq'], precision=hi).reshape(B, S, H, A)
    K = jnp.einsum('bse,ef->bsf', x, p['wk'], precision=hi).reshape(B, S, H, A)
    V = jnp.einsum('bse,ef->bsf', x, p['wv'], precision=hi).reshape(B, S, H, A)
    s = jnp.einsum('bsha,btha->bhst', Q, K, precision=hi) / math.sqrt(E)
    mask = jnp.tril(jnp.ones((S, S), bool))
    s = jnp.where(mask[None, None], s, -jnp.inf)
    self_attn = jnp.einsum('bhst,btha->bsha', jax.nn.softmax(s, -1), V,
                           precision=hi).reshape(B, S, E)
    attention = jnp.einsum('bse,ef->bsf', self_attn, p['wproj'], precision=hi)
    x1 = _layer_norm(x + attention, p['ln_gamma'][0], p['ln_beta'][0])
    sc = jnp.einsum('bsha,bhta->bhst', Q, kc, precision=hi) / math.sqrt(S_enc)
    cross = jnp.einsum('bhst,bhta->bsha', jax.nn.softmax(sc, -1), vc,
                       precision=hi).reshape(B, S, E)
    final_attn = _layer_norm(cross + x1, p['ln_gamma'][1], p['ln_beta'][1])
    hidden = jnp.einsum('bse,ef->bsf', final_attn, p['w1'], precision=hi) + p['b1'][0]
    ff = jax.nn.relu(jnp.einsum('bsf,fe->bse', hidden, p['w2'], precision=hi) + p['b2'][0])
    decoded = _layer_norm(final_attn + ff, p['ln_gamma'][2], p['ln_beta'][2])
    return _layer_norm(final_attn + decoded, p['ln_gamma'][3], p['ln_beta'][3])


if __name__ == "__main__":
    B, S, S_enc = 2, 8, 8
    E, A = 32, 8
    H = E // A
    HID = 4 * E

    key = jax.random.PRNGKey(0)
    ks = jax.random.split(key, 14)
    emb = jax.random.normal(ks[0], (B, S, E), jnp.float32)
    pos = jax.random.normal(ks[1], (S, E), jnp.float32)
    # kv_tensors: single encoder, per-head (K, V) pairs -> (B, H, S_enc, A)
    k_cross = jax.random.normal(ks[2], (B, H, S_enc, A), jnp.float32)
    v_cross = jax.random.normal(ks[3], (B, H, S_enc, A), jnp.float32)

    w = 0.1
    params = {
        # per-head Q/K/V weights, heads concatenated along the output dim, stored (in, out)
        'wq': w * jax.random.normal(ks[4], (E, E), jnp.float32),
        'wk': w * jax.random.normal(ks[5], (E, E), jnp.float32),
        'wv': w * jax.random.normal(ks[6], (E, E), jnp.float32),
        'wproj': w * jax.random.normal(ks[7], (E, E), jnp.float32),       # _input_attn_linear_proj (no bias)
        'w1': w * jax.random.normal(ks[8], (E, HID), jnp.float32),        # FeedForward._hidden
        'b1': w * jax.random.normal(ks[9], (1, HID), jnp.float32),
        'w2': w * jax.random.normal(ks[10], (HID, E), jnp.float32),       # FeedForward._output
        'b2': w * jax.random.normal(ks[11], (1, E), jnp.float32),
        # LayerNorm params: rows = [input, encoder_decoder, ff_internal, output]
        'ln_gamma': 1.0 + 0.1 * jax.random.normal(ks[12], (4, E), jnp.float32),
        'ln_beta': 0.1 * jax.random.normal(ks[13], (4, E), jnp.float32),
    }

    # One-time weight fusion, deliberately outside the per-call path.
    prepped = prepare_params(params, A)

    fwd = jax.jit(lambda e, q, kc, vc: transformer_decoder(e, q, kc, vc, prepped))
    out = fwd(emb, pos, k_cross, v_cross)
    jax.block_until_ready(out)

    ref = ref_forward(emb, pos, k_cross, v_cross, params)
    assert out.shape == (B, S, E)
    assert np.allclose(np.asarray(out), np.asarray(ref), rtol=2e-2, atol=2e-2), \
        "Pallas kernel mismatch vs JAX reference"
    print("KERNEL_OK")
</pallas_src>

<mosaic_0001>
module attributes {stable_mosaic.version = 11 : i64} {
  func.func @decoder_kernel(%arg0: i32, %arg1: memref<2x8x32xf32, #tpu.memory_space<vmem>>, %arg2: memref<8x32xf32, #tpu.memory_space<vmem>>, %arg3: memref<2x4x8x8xf32, #tpu.memory_space<vmem>>, %arg4: memref<2x4x8x8xf32, #tpu.memory_space<vmem>>, %arg5: memref<32x96xf32, #tpu.memory_space<vmem>>, %arg6: memref<32x32xf32, #tpu.memory_space<vmem>>, %arg7: memref<32x128xf32, #tpu.memory_space<vmem>>, %arg8: memref<1x128xf32, #tpu.memory_space<vmem>>, %arg9: memref<128x32xf32, #tpu.memory_space<vmem>>, %arg10: memref<1x32xf32, #tpu.memory_space<vmem>>, %arg11: memref<4x32xf32, #tpu.memory_space<vmem>>, %arg12: memref<4x32xf32, #tpu.memory_space<vmem>>, %arg13: memref<2x8x32xf32, #tpu.memory_space<vmem>>) attributes {dimension_semantics = [#tpu.dimension_semantics<arbitrary>], iteration_bounds = array<i64: 1>, scalar_prefetch = 0 : i64, scratch_operands = 0 : i64, tpu.core_type = #tpu.core_type<tc>, window_params = [{pipeline_mode = #tpu.pipeline_mode<synchronous>, transform_indices = @transform_0, window_bounds = array<i64: 2, 8, 32>}, {pipeline_mode = #tpu.pipeline_mode<synchronous>, transform_indices = @transform_1, window_bounds = array<i64: 8, 32>}, {pipeline_mode = #tpu.pipeline_mode<synchronous>, transform_indices = @transform_2, window_bounds = array<i64: 2, 4, 8, 8>}, {pipeline_mode = #tpu.pipeline_mode<synchronous>, transform_indices = @transform_3, window_bounds = array<i64: 2, 4, 8, 8>}, {pipeline_mode = #tpu.pipeline_mode<synchronous>, transform_indices = @transform_4, window_bounds = array<i64: 32, 96>}, {pipeline_mode = #tpu.pipeline_mode<synchronous>, transform_indices = @transform_5, window_bounds = array<i64: 32, 32>}, {pipeline_mode = #tpu.pipeline_mode<synchronous>, transform_indices = @transform_6, window_bounds = array<i64: 32, 128>}, {pipeline_mode = #tpu.pipeline_mode<synchronous>, transform_indices = @transform_7, window_bounds = array<i64: 1, 128>}, {pipeline_mode = #tpu.pipeline_mode<synchronous>, transform_indices = @transform_8, window_bounds = array<i64: 128, 32>}, {pipeline_mode = #tpu.pipeline_mode<synchronous>, transform_indices = @transform_9, window_bounds = array<i64: 1, 32>}, {pipeline_mode = #tpu.pipeline_mode<synchronous>, transform_indices = @transform_10, window_bounds = array<i64: 4, 32>}, {pipeline_mode = #tpu.pipeline_mode<synchronous>, transform_indices = @transform_11, window_bounds = array<i64: 4, 32>}, {pipeline_mode = #tpu.pipeline_mode<synchronous>, transform_indices = @transform_12, window_bounds = array<i64: 2, 8, 32>}]} {
    %c0 = arith.constant 0 : index
    %c0_0 = arith.constant 0 : index
    %c0_1 = arith.constant 0 : index
    %0 = vector.load %arg1[%c0, %c0_0, %c0_1] : memref<2x8x32xf32, #tpu.memory_space<vmem>>, vector<2x8x32xf32>
    %c0_2 = arith.constant 0 : index
    %c0_3 = arith.constant 0 : index
    %1 = vector.load %arg2[%c0_2, %c0_3] : memref<8x32xf32, #tpu.memory_space<vmem>>, vector<8x32xf32>
    %2 = vector.shape_cast %1 : vector<8x32xf32> to vector<1x8x32xf32>
    %3 = vector.broadcast %2 : vector<1x8x32xf32> to vector<2x8x32xf32>
    %4 = arith.addf %0, %3 : vector<2x8x32xf32>
    %5 = vector.shape_cast %4 : vector<2x8x32xf32> to vector<16x32xf32>
    %c0_4 = arith.constant 0 : index
    %c0_5 = arith.constant 0 : index
    %6 = vector.load %arg5[%c0_4, %c0_5] : memref<32x96xf32, #tpu.memory_space<vmem>>, vector<32x96xf32>
    %cst = arith.constant dense<0.000000e+00> : vector<16x96xf32>
    %7 = tpu.matmul %5, %6, %cst {dimension_numbers = #tpu.dot_dimension_numbers<[1], [0], [0], [1], [0, 0, 1, 1], [], []>} : vector<16x32xf32>, vector<32x96xf32>, vector<16x96xf32> -> vector<16x96xf32>
    %8 = vector.shape_cast %7 : vector<16x96xf32> to vector<2x8x4x24xf32>
    %9 = tpu.transpose %8, [0, 2, 1, 3] : vector<2x8x4x24xf32> -> vector<2x4x8x24xf32>
    %10 = vector.shape_cast %9 : vector<2x4x8x24xf32> to vector<8x8x24xf32>
    %11 = vector.extract_strided_slice %10 {offsets = [0, 0, 0], sizes = [8, 8, 8], strides = [1, 1, 1]} : vector<8x8x24xf32> to vector<8x8x8xf32>
    %12 = vector.extract_strided_slice %10 {offsets = [0, 0, 8], sizes = [8, 8, 8], strides = [1, 1, 1]} : vector<8x8x24xf32> to vector<8x8x8xf32>
    %13 = vector.extract_strided_slice %10 {offsets = [0, 0, 16], sizes = [8, 8, 8], strides = [1, 1, 1]} : vector<8x8x24xf32> to vector<8x8x8xf32>
    %14 = tpu.iota {dimensions = array<i32: 0>} : vector<8x8xi32>
    %15 = tpu.iota {dimensions = array<i32: 1>} : vector<8x8xi32>
    %16 = arith.cmpi sge, %14, %15 : vector<8x8xi32>
    %cst_6 = arith.constant 0.176776692 : f32
    %17 = vector.broadcast %cst_6 : f32 to vector<8x8x8xf32>
    %18 = arith.mulf %11, %17 : vector<8x8x8xf32>
    "tpu.trace_start"() <{level = 10 : i32, message = "nqa,nka->nqk"}> : () -> ()
    %cst_7 = arith.constant dense<0.000000e+00> : vector<8x8x8xf32>
    %19 = tpu.matmul %18, %12, %cst_7 {dimension_numbers = #tpu.dot_dimension_numbers<[2], [2], [1], [1], [0, 0, 0, 1, 1, 1], [0], [0]>} : vector<8x8x8xf32>, vector<8x8x8xf32>, vector<8x8x8xf32> -> vector<8x8x8xf32>
    "tpu.trace_stop"() : () -> ()
    %20 = vector.shape_cast %16 : vector<8x8xi1> to vector<1x8x8xi1>
    %cst_8 = arith.constant -1.000000e+30 : f32
    %21 = vector.shape_cast %20 : vector<1x8x8xi1> to vector<1x8x8xi1>
    %22 = vector.broadcast %21 : vector<1x8x8xi1> to vector<8x8x8xi1>
    %23 = vector.broadcast %cst_8 : f32 to vector<8x8x8xf32>
    %24 = arith.select %22, %19, %23 : vector<8x8x8xi1>, vector<8x8x8xf32>
    %cst_9 = arith.constant dense<0xFF800000> : vector<8x8xf32>
    %25 = vector.multi_reduction <maximumf>, %24, %cst_9 [2] : vector<8x8x8xf32> to vector<8x8xf32>
    %26 = vector.shape_cast %25 : vector<8x8xf32> to vector<8x8x1xf32>
    %27 = vector.broadcast %26 : vector<8x8x1xf32> to vector<8x8x8xf32>
    %28 = arith.subf %24, %27 : vector<8x8x8xf32>
    %29 = math.exp %28 : vector<8x8x8xf32>
    %cst_10 = arith.constant dense<0.000000e+00> : vector<8x8xf32>
    %30 = vector.multi_reduction <add>, %29, %cst_10 [2] : vector<8x8x8xf32> to vector<8x8xf32>
    %31 = vector.shape_cast %30 : vector<8x8xf32> to vector<8x8x1xf32>
    %32 = tpu.reciprocal %31 {approx = true} : vector<8x8x1xf32> -> vector<8x8x1xf32>
    %33 = vector.broadcast %32 : vector<8x8x1xf32> to vector<8x8x8xf32>
    %34 = arith.mulf %29, %33 : vector<8x8x8xf32>
    "tpu.trace_start"() <{level = 10 : i32, message = "nqk,nka->nqa"}> : () -> ()
    %cst_11 = arith.constant dense<0.000000e+00> : vector<8x8x8xf32>
    %35 = tpu.matmul %34, %13, %cst_11 {dimension_numbers = #tpu.dot_dimension_numbers<[2], [1], [1], [2], [0, 0, 0, 1, 1, 2], [0], [0]>} : vector<8x8x8xf32>, vector<8x8x8xf32>, vector<8x8x8xf32> -> vector<8x8x8xf32>
    "tpu.trace_stop"() : () -> ()
    %36 = vector.shape_cast %35 : vector<8x8x8xf32> to vector<2x4x8x8xf32>
    %37 = tpu.transpose %36, [0, 2, 1, 3] : vector<2x4x8x8xf32> -> vector<2x8x4x8xf32>
    %38 = vector.shape_cast %37 : vector<2x8x4x8xf32> to vector<16x32xf32>
    %c0_12 = arith.constant 0 : index
    %c0_13 = arith.constant 0 : index
    %39 = vector.load %arg6[%c0_12, %c0_13] : memref<32x32xf32, #tpu.memory_space<vmem>>, vector<32x32xf32>
    %cst_14 = arith.constant dense<0.000000e+00> : vector<16x32xf32>
    %40 = tpu.matmul %38, %39, %cst_14 {dimension_numbers = #tpu.dot_dimension_numbers<[1], [0], [0], [1], [0, 0, 1, 1], [], []>} : vector<16x32xf32>, vector<32x32xf32>, vector<16x32xf32> -> vector<16x32xf32>
    %41 = arith.addf %5, %40 : vector<16x32xf32>
    %c0_15 = arith.constant 0 : index
    %c0_16 = arith.constant 0 : index
    %42 = vector.load %arg11[%c0_15, %c0_16] : memref<4x32xf32, #tpu.memory_space<vmem>>, vector<1x32xf32>
    %c0_17 = arith.constant 0 : index
    %c0_18 = arith.constant 0 : index
    %43 = vector.load %arg12[%c0_17, %c0_18] : memref<4x32xf32, #tpu.memory_space<vmem>>, vector<1x32xf32>
    %cst_19 = arith.constant dense<0.000000e+00> : vector<16xf32>
    %44 = vector.multi_reduction <add>, %41, %cst_19 [1] : vector<16x32xf32> to vector<16xf32>
    %45 = vector.shape_cast %44 : vector<16xf32> to vector<16x1xf32>
    %cst_20 = arith.constant 3.200000e+01 : f32
    %46 = vector.broadcast %cst_20 : f32 to vector<16x1xf32>
    %47 = arith.divf %45, %46 : vector<16x1xf32>
    %48 = vector.broadcast %47 : vector<16x1xf32> to vector<16x32xf32>
    %49 = arith.subf %41, %48 : vector<16x32xf32>
    %50 = arith.mulf %49, %49 : vector<16x32xf32>
    %cst_21 = arith.constant dense<0.000000e+00> : vector<16xf32>
    %51 = vector.multi_reduction <add>, %50, %cst_21 [1] : vector<16x32xf32> to vector<16xf32>
    %52 = vector.shape_cast %51 : vector<16xf32> to vector<16x1xf32>
    %cst_22 = arith.constant 3.200000e+01 : f32
    %53 = vector.broadcast %cst_22 : f32 to vector<16x1xf32>
    %54 = arith.divf %52, %53 : vector<16x1xf32>
    %55 = vector.broadcast %47 : vector<16x1xf32> to vector<16x32xf32>
    %56 = arith.subf %41, %55 : vector<16x32xf32>
    %cst_23 = arith.constant 9.99999974E-6 : f32
    %57 = vector.broadcast %cst_23 : f32 to vector<16x1xf32>
    %58 = arith.addf %54, %57 : vector<16x1xf32>
    %59 = math.rsqrt %58 : vector<16x1xf32>
    %60 = vector.broadcast %59 : vector<16x1xf32> to vector<16x32xf32>
    %61 = arith.mulf %56, %60 : vector<16x32xf32>
    %62 = vector.broadcast %42 : vector<1x32xf32> to vector<16x32xf32>
    %63 = arith.mulf %61, %62 : vector<16x32xf32>
    %64 = vector.broadcast %43 : vector<1x32xf32> to vector<16x32xf32>
    %65 = arith.addf %63, %64 : vector<16x32xf32>
    %c0_24 = arith.constant 0 : index
    %c0_25 = arith.constant 0 : index
    %c0_26 = arith.constant 0 : index
    %c0_27 = arith.constant 0 : index
    %66 = vector.load %arg3[%c0_24, %c0_25, %c0_26, %c0_27] : memref<2x4x8x8xf32, #tpu.memory_space<vmem>>, vector<2x4x8x8xf32>
    %67 = vector.shape_cast %66 : vector<2x4x8x8xf32> to vector<8x8x8xf32>
    %c0_28 = arith.constant 0 : index
    %c0_29 = arith.constant 0 : index
    %c0_30 = arith.constant 0 : index
    %c0_31 = arith.constant 0 : index
    %68 = vector.load %arg4[%c0_28, %c0_29, %c0_30, %c0_31] : memref<2x4x8x8xf32, #tpu.memory_space<vmem>>, vector<2x4x8x8xf32>
    %69 = vector.shape_cast %68 : vector<2x4x8x8xf32> to vector<8x8x8xf32>
    %cst_32 = arith.constant 0.353553385 : f32
    %70 = vector.broadcast %cst_32 : f32 to vector<8x8x8xf32>
    %71 = arith.mulf %11, %70 : vector<8x8x8xf32>
    "tpu.trace_start"() <{level = 10 : i32, message = "nqa,nka->nqk"}> : () -> ()
    %cst_33 = arith.constant dense<0.000000e+00> : vector<8x8x8xf32>
    %72 = tpu.matmul %71, %67, %cst_33 {dimension_numbers = #tpu.dot_dimension_numbers<[2], [2], [1], [1], [0, 0, 0, 1, 1, 1], [0], [0]>} : vector<8x8x8xf32>, vector<8x8x8xf32>, vector<8x8x8xf32> -> vector<8x8x8xf32>
    "tpu.trace_stop"() : () -> ()
    %cst_34 = arith.constant dense<0xFF800000> : vector<8x8xf32>
    %73 = vector.multi_reduction <maximumf>, %72, %cst_34 [2] : vector<8x8x8xf32> to vector<8x8xf32>
    %74 = vector.shape_cast %73 : vector<8x8xf32> to vector<8x8x1xf32>
    %75 = vector.broadcast %74 : vector<8x8x1xf32> to vector<8x8x8xf32>
    %76 = arith.subf %72, %75 : vector<8x8x8xf32>
    %77 = math.exp %76 : vector<8x8x8xf32>
    %cst_35 = arith.constant dense<0.000000e+00> : vector<8x8xf32>
    %78 = vector.multi_reduction <add>, %77, %cst_35 [2] : vector<8x8x8xf32> to vector<8x8xf32>
    %79 = vector.shape_cast %78 : vector<8x8xf32> to vector<8x8x1xf32>
    %80 = tpu.reciprocal %79 {approx = true} : vector<8x8x1xf32> -> vector<8x8x1xf32>
    %81 = vector.broadcast %80 : vector<8x8x1xf32> to vector<8x8x8xf32>
    %82 = arith.mulf %77, %81 : vector<8x8x8xf32>
    "tpu.trace_start"() <{level = 10 : i32, message = "nqk,nka->nqa"}> : () -> ()
    %cst_36 = arith.constant dense<0.000000e+00> : vector<8x8x8xf32>
    %83 = tpu.matmul %82, %69, %cst_36 {dimension_numbers = #tpu.dot_dimension_numbers<[2], [1], [1], [2], [0, 0, 0, 1, 1, 2], [0], [0]>} : vector<8x8x8xf32>, vector<8x8x8xf32>, vector<8x8x8xf32> -> vector<8x8x8xf32>
    "tpu.trace_stop"() : () -> ()
    %84 = vector.shape_cast %83 : vector<8x8x8xf32> to vector<2x4x8x8xf32>
    %85 = tpu.transpose %84, [0, 2, 1, 3] : vector<2x4x8x8xf32> -> vector<2x8x4x8xf32>
    %86 = vector.shape_cast %85 : vector<2x8x4x8xf32> to vector<16x32xf32>
    %87 = arith.addf %86, %65 : vector<16x32xf32>
    %c1 = arith.constant 1 : index
    %c0_37 = arith.constant 0 : index
    %88 = vector.load %arg11[%c1, %c0_37] : memref<4x32xf32, #tpu.memory_space<vmem>>, vector<1x32xf32>
    %c1_38 = arith.constant 1 : index
    %c0_39 = arith.constant 0 : index
    %89 = vector.load %arg12[%c1_38, %c0_39] : memref<4x32xf32, #tpu.memory_space<vmem>>, vector<1x32xf32>
    %cst_40 = arith.constant dense<0.000000e+00> : vector<16xf32>
    %90 = vector.multi_reduction <add>, %87, %cst_40 [1] : vector<16x32xf32> to vector<16xf32>
    %91 = vector.shape_cast %90 : vector<16xf32> to vector<16x1xf32>
    %cst_41 = arith.constant 3.200000e+01 : f32
    %92 = vector.broadcast %cst_41 : f32 to vector<16x1xf32>
    %93 = arith.divf %91, %92 : vector<16x1xf32>
    %94 = vector.broadcast %93 : vector<16x1xf32> to vector<16x32xf32>
    %95 = arith.subf %87, %94 : vector<16x32xf32>
    %96 = arith.mulf %95, %95 : vector<16x32xf32>
    %cst_42 = arith.constant dense<0.000000e+00> : vector<16xf32>
    %97 = vector.multi_reduction <add>, %96, %cst_42 [1] : vector<16x32xf32> to vector<16xf32>
    %98 = vector.shape_cast %97 : vector<16xf32> to vector<16x1xf32>
    %cst_43 = arith.constant 3.200000e+01 : f32
    %99 = vector.broadcast %cst_43 : f32 to vector<16x1xf32>
    %100 = arith.divf %98, %99 : vector<16x1xf32>
    %101 = vector.broadcast %93 : vector<16x1xf32> to vector<16x32xf32>
    %102 = arith.subf %87, %101 : vector<16x32xf32>
    %cst_44 = arith.constant 9.99999974E-6 : f32
    %103 = vector.broadcast %cst_44 : f32 to vector<16x1xf32>
    %104 = arith.addf %100, %103 : vector<16x1xf32>
    %105 = math.rsqrt %104 : vector<16x1xf32>
    %106 = vector.broadcast %105 : vector<16x1xf32> to vector<16x32xf32>
    %107 = arith.mulf %102, %106 : vector<16x32xf32>
    %108 = vector.broadcast %88 : vector<1x32xf32> to vector<16x32xf32>
    %109 = arith.mulf %107, %108 : vector<16x32xf32>
    %110 = vector.broadcast %89 : vector<1x32xf32> to vector<16x32xf32>
    %111 = arith.addf %109, %110 : vector<16x32xf32>
    %c0_45 = arith.constant 0 : index
    %c0_46 = arith.constant 0 : index
    %112 = vector.load %arg7[%c0_45, %c0_46] : memref<32x128xf32, #tpu.memory_space<vmem>>, vector<32x128xf32>
    %cst_47 = arith.constant dense<0.000000e+00> : vector<16x128xf32>
    %113 = tpu.matmul %111, %112, %cst_47 {dimension_numbers = #tpu.dot_dimension_numbers<[1], [0], [0], [1], [0, 0, 1, 1], [], []>} : vector<16x32xf32>, vector<32x128xf32>, vector<16x128xf32> -> vector<16x128xf32>
    %c0_48 = arith.constant 0 : index
    %c0_49 = arith.constant 0 : index
    %114 = vector.load %arg8[%c0_48, %c0_49] : memref<1x128xf32, #tpu.memory_space<vmem>>, vector<1x128xf32>
    %115 = vector.broadcast %114 : vector<1x128xf32> to vector<16x128xf32>
    %116 = arith.addf %113, %115 : vector<16x128xf32>
    %c0_50 = arith.constant 0 : index
    %c0_51 = arith.constant 0 : index
    %117 = vector.load %arg9[%c0_50, %c0_51] : memref<128x32xf32, #tpu.memory_space<vmem>>, vector<128x32xf32>
    %cst_52 = arith.constant dense<0.000000e+00> : vector<16x32xf32>
    %118 = tpu.matmul %116, %117, %cst_52 {dimension_numbers = #tpu.dot_dimension_numbers<[1], [0], [0], [1], [0, 0, 1, 1], [], []>} : vector<16x128xf32>, vector<128x32xf32>, vector<16x32xf32> -> vector<16x32xf32>
    %c0_53 = arith.constant 0 : index
    %c0_54 = arith.constant 0 : index
    %119 = vector.load %arg10[%c0_53, %c0_54] : memref<1x32xf32, #tpu.memory_space<vmem>>, vector<1x32xf32>
    %120 = vector.broadcast %119 : vector<1x32xf32> to vector<16x32xf32>
    %121 = arith.addf %118, %120 : vector<16x32xf32>
    %cst_55 = arith.constant 0.000000e+00 : f32
    %122 = vector.broadcast %cst_55 : f32 to vector<16x32xf32>
    %123 = arith.maximumf %121, %122 : vector<16x32xf32>
    %124 = arith.addf %111, %123 : vector<16x32xf32>
    %c2 = arith.constant 2 : index
    %c0_56 = arith.constant 0 : index
    %125 = vector.load %arg11[%c2, %c0_56] : memref<4x32xf32, #tpu.memory_space<vmem>>, vector<1x32xf32>
    %c2_57 = arith.constant 2 : index
    %c0_58 = arith.constant 0 : index
    %126 = vector.load %arg12[%c2_57, %c0_58] : memref<4x32xf32, #tpu.memory_space<vmem>>, vector<1x32xf32>
    %cst_59 = arith.constant dense<0.000000e+00> : vector<16xf32>
    %127 = vector.multi_reduction <add>, %124, %cst_59 [1] : vector<16x32xf32> to vector<16xf32>
    %128 = vector.shape_cast %127 : vector<16xf32> to vector<16x1xf32>
    %cst_60 = arith.constant 3.200000e+01 : f32
    %129 = vector.broadcast %cst_60 : f32 to vector<16x1xf32>
    %130 = arith.divf %128, %129 : vector<16x1xf32>
    %131 = vector.broadcast %130 : vector<16x1xf32> to vector<16x32xf32>
    %132 = arith.subf %124, %131 : vector<16x32xf32>
    %133 = arith.mulf %132, %132 : vector<16x32xf32>
    %cst_61 = arith.constant dense<0.000000e+00> : vector<16xf32>
    %134 = vector.multi_reduction <add>, %133, %cst_61 [1] : vector<16x32xf32> to vector<16xf32>
    %135 = vector.shape_cast %134 : vector<16xf32> to vector<16x1xf32>
    %cst_62 = arith.constant 3.200000e+01 : f32
    %136 = vector.broadcast %cst_62 : f32 to vector<16x1xf32>
    %137 = arith.divf %135, %136 : vector<16x1xf32>
    %138 = vector.broadcast %130 : vector<16x1xf32> to vector<16x32xf32>
    %139 = arith.subf %124, %138 : vector<16x32xf32>
    %cst_63 = arith.constant 9.99999974E-6 : f32
    %140 = vector.broadcast %cst_63 : f32 to vector<16x1xf32>
    %141 = arith.addf %137, %140 : vector<16x1xf32>
    %142 = math.rsqrt %141 : vector<16x1xf32>
    %143 = vector.broadcast %142 : vector<16x1xf32> to vector<16x32xf32>
    %144 = arith.mulf %139, %143 : vector<16x32xf32>
    %145 = vector.broadcast %125 : vector<1x32xf32> to vector<16x32xf32>
    %146 = arith.mulf %144, %145 : vector<16x32xf32>
    %147 = vector.broadcast %126 : vector<1x32xf32> to vector<16x32xf32>
    %148 = arith.addf %146, %147 : vector<16x32xf32>
    %149 = arith.addf %111, %148 : vector<16x32xf32>
    %c3 = arith.constant 3 : index
    %c0_64 = arith.constant 0 : index
    %150 = vector.load %arg11[%c3, %c0_64] : memref<4x32xf32, #tpu.memory_space<vmem>>, vector<1x32xf32>
    %c3_65 = arith.constant 3 : index
    %c0_66 = arith.constant 0 : index
    %151 = vector.load %arg12[%c3_65, %c0_66] : memref<4x32xf32, #tpu.memory_space<vmem>>, vector<1x32xf32>
    %cst_67 = arith.constant dense<0.000000e+00> : vector<16xf32>
    %152 = vector.multi_reduction <add>, %149, %cst_67 [1] : vector<16x32xf32> to vector<16xf32>
    %153 = vector.shape_cast %152 : vector<16xf32> to vector<16x1xf32>
    %cst_68 = arith.constant 3.200000e+01 : f32
    %154 = vector.broadcast %cst_68 : f32 to vector<16x1xf32>
    %155 = arith.divf %153, %154 : vector<16x1xf32>
    %156 = vector.broadcast %155 : vector<16x1xf32> to vector<16x32xf32>
    %157 = arith.subf %149, %156 : vector<16x32xf32>
    %158 = arith.mulf %157, %157 : vector<16x32xf32>
    %cst_69 = arith.constant dense<0.000000e+00> : vector<16xf32>
    %159 = vector.multi_reduction <add>, %158, %cst_69 [1] : vector<16x32xf32> to vector<16xf32>
    %160 = vector.shape_cast %159 : vector<16xf32> to vector<16x1xf32>
    %cst_70 = arith.constant 3.200000e+01 : f32
    %161 = vector.broadcast %cst_70 : f32 to vector<16x1xf32>
    %162 = arith.divf %160, %161 : vector<16x1xf32>
    %163 = vector.broadcast %155 : vector<16x1xf32> to vector<16x32xf32>
    %164 = arith.subf %149, %163 : vector<16x32xf32>
    %cst_71 = arith.constant 9.99999974E-6 : f32
    %165 = vector.broadcast %cst_71 : f32 to vector<16x1xf32>
    %166 = arith.addf %162, %165 : vector<16x1xf32>
    %167 = math.rsqrt %166 : vector<16x1xf32>
    %168 = vector.broadcast %167 : vector<16x1xf32> to vector<16x32xf32>
    %169 = arith.mulf %164, %168 : vector<16x32xf32>
    %170 = vector.broadcast %150 : vector<1x32xf32> to vector<16x32xf32>
    %171 = arith.mulf %169, %170 : vector<16x32xf32>
    %172 = vector.broadcast %151 : vector<1x32xf32> to vector<16x32xf32>
    %173 = arith.addf %171, %172 : vector<16x32xf32>
    %174 = vector.shape_cast %173 : vector<16x32xf32> to vector<2x8x32xf32>
    %c0_72 = arith.constant 0 : index
    %c0_73 = arith.constant 0 : index
    %c0_74 = arith.constant 0 : index
    %175 = vector.load %arg13[%c0_72, %c0_73, %c0_74] : memref<2x8x32xf32, #tpu.memory_space<vmem>>, vector<2x8x32xf32>
    tpu.vector_store %arg13[%c0_72, %c0_73, %c0_74], %174 {strides = array<i32>} : memref<2x8x32xf32, #tpu.memory_space<vmem>>, vector<2x8x32xf32>,
    return
  }
  func.func @transform_0(%arg0: i32) -> (i32, i32, i32) {
    %c0_i32 = arith.constant 0 : i32
    %c0_i32_0 = arith.constant 0 : i32
    %c0_i32_1 = arith.constant 0 : i32
    %c0_i32_2 = arith.constant 0 : i32
    return %c0_i32, %c0_i32_0, %c0_i32_1 : i32, i32, i32
  }
  func.func @transform_1(%arg0: i32) -> (i32, i32) {
    %c0_i32 = arith.constant 0 : i32
    %c0_i32_0 = arith.constant 0 : i32
    %c0_i32_1 = arith.constant 0 : i32
    return %c0_i32, %c0_i32_0 : i32, i32
  }
  func.func @transform_2(%arg0: i32) -> (i32, i32, i32, i32) {
    %c0_i32 = arith.constant 0 : i32
    %c0_i32_0 = arith.constant 0 : i32
    %c0_i32_1 = arith.constant 0 : i32
    %c0_i32_2 = arith.constant 0 : i32
    %c0_i32_3 = arith.constant 0 : i32
    return %c0_i32, %c0_i32_0, %c0_i32_1, %c0_i32_2 : i32, i32, i32, i32
  }
  func.func @transform_3(%arg0: i32) -> (i32, i32, i32, i32) {
    %c0_i32 = arith.constant 0 : i32
    %c0_i32_0 = arith.constant 0 : i32
    %c0_i32_1 = arith.constant 0 : i32
    %c0_i32_2 = arith.constant 0 : i32
    %c0_i32_3 = arith.constant 0 : i32
    return %c0_i32, %c0_i32_0, %c0_i32_1, %c0_i32_2 : i32, i32, i32, i32
  }
  func.func @transform_4(%arg0: i32) -> (i32, i32) {
    %c0_i32 = arith.constant 0 : i32
    %c0_i32_0 = arith.constant 0 : i32
    %c0_i32_1 = arith.constant 0 : i32
    return %c0_i32, %c0_i32_0 : i32, i32
  }
  func.func @transform_5(%arg0: i32) -> (i32, i32) {
    %c0_i32 = arith.constant 0 : i32
    %c0_i32_0 = arith.constant 0 : i32
    %c0_i32_1 = arith.constant 0 : i32
    return %c0_i32, %c0_i32_0 : i32, i32
  }
  func.func @transform_6(%arg0: i32) -> (i32, i32) {
    %c0_i32 = arith.constant 0 : i32
    %c0_i32_0 = arith.constant 0 : i32
    %c0_i32_1 = arith.constant 0 : i32
    return %c0_i32, %c0_i32_0 : i32, i32
  }
  func.func @transform_7(%arg0: i32) -> (i32, i32) {
    %c0_i32 = arith.constant 0 : i32
    %c0_i32_0 = arith.constant 0 : i32
    %c0_i32_1 = arith.constant 0 : i32
    return %c0_i32, %c0_i32_0 : i32, i32
  }
  func.func @transform_8(%arg0: i32) -> (i32, i32) {
    %c0_i32 = arith.constant 0 : i32
    %c0_i32_0 = arith.constant 0 : i32
    %c0_i32_1 = arith.constant 0 : i32
    return %c0_i32, %c0_i32_0 : i32, i32
  }
  func.func @transform_9(%arg0: i32) -> (i32, i32) {
    %c0_i32 = arith.constant 0 : i32
    %c0_i32_0 = arith.constant 0 : i32
    %c0_i32_1 = arith.constant 0 : i32
    return %c0_i32, %c0_i32_0 : i32, i32
  }
  func.func @transform_10(%arg0: i32) -> (i32, i32) {
    %c0_i32 = arith.constant 0 : i32
    %c0_i32_0 = arith.constant 0 : i32
    %c0_i32_1 = arith.constant 0 : i32
    return %c0_i32, %c0_i32_0 : i32, i32
  }
  func.func @transform_11(%arg0: i32) -> (i32, i32) {
    %c0_i32 = arith.constant 0 : i32
    %c0_i32_0 = arith.constant 0 : i32
    %c0_i32_1 = arith.constant 0 : i32
    return %c0_i32, %c0_i32_0 : i32, i32
  }
  func.func @transform_12(%arg0: i32) -> (i32, i32, i32) {
    %c0_i32 = arith.constant 0 : i32
    %c0_i32_0 = arith.constant 0 : i32
    %c0_i32_1 = arith.constant 0 : i32
    %c0_i32_2 = arith.constant 0 : i32
    return %c0_i32, %c0_i32_0, %c0_i32_1 : i32, i32, i32
  }
}

</mosaic_0001>

<bundles_post_ra>
// kernel: _lambda_.1
= control target key start
LH: loop header
LB: loop body
LE: loop exit
PB: predicated region body
PF: predicated region fallthrough
CT: control target
= control target key end

     0   :  { %17 = vsyncpa [#allocation3], 0  ;;  %s5646_s0 = inlined_call_operand.hbm [shape: f32[2,8,32], index: 0, kind: input, shape index: {}]   ;;  %s5647_s1 = inlined_call_operand.hbm [shape: f32[8,32], index: 1, kind: input, shape index: {}]   ;;  %s5648_s2 = inlined_call_operand.hbm [shape: f32[2,4,8,8], index: 2, kind: input, shape index: {}]   ;;  %s5649_s3 = inlined_call_operand.hbm [shape: f32[2,4,8,8], index: 3, kind: input, shape index: {}]   ;;  %s5650_s4 = inlined_call_operand.hbm [shape: f32[32,96], index: 4, kind: input, shape index: {}]   ;;  %s5651_s5 = inlined_call_operand.hbm [shape: f32[32,32], index: 5, kind: input, shape index: {}]   ;;  %s5652_s6 = inlined_call_operand.hbm [shape: f32[32,128], index: 6, kind: input, shape index: {}]   ;;  %s5653_s7 = inlined_call_operand.vmem [shape: f32[1,128], index: 7, kind: input, shape index: {}]   ;;  %s5654_s8 = inlined_call_operand.hbm [shape: f32[128,32], index: 8, kind: input, shape index: {}]   ;;  %s5655_s9 = inlined_call_operand.vmem [shape: f32[1,32], index: 9, kind: input, shape index: {}]   ;;  %s5656_s10 = inlined_call_operand.vmem [shape: f32[4,32], index: 10, kind: input, shape index: {}]   ;;  %s5657_s11 = inlined_call_operand.vmem [shape: f32[4,32], index: 11, kind: input, shape index: {}]   ;;  %s5658_s12 = inlined_call_operand.hbm [shape: f32[2,8,32], index: 12, kind: output, shape index: {}]  }
   0x1   :  { %18 = vsyncpa [#allocation6], 0 }
   0x2   :  { %19 = vsyncpa [#allocation9], 0 }
   0x3   :  { %20 = vsyncpa [#allocation12], 0 }
   0x4   :  { %21 = vsyncpa [#allocation15], 0 }
   0x5   :  { %22 = vsyncpa [#allocation4], 0  ;;  %s4953_s21 = smov [#allocation5]  }
   0x6   :  { %s41_s22 = sshll.u32 %s4953_s21, 4  ;;  %s42_s22 = int_to_ptr.vmem [resolvable:$true] %s41_s22 }
   0x7   :  { %s4769_s23 = scalar_lea.vmem %s42_s22, 128  ;;  %p4774_p1 = scmp.lt.s32.totalorder %s42_s22, %s42_s22 }
   0x8   :  { %p4770_p0 = scmp.ne.s32.totalorder %s42_s22, %s4769_s23  ;;  %p4775_p2 = scmp.lt.s32.totalorder %s4769_s23, %s4769_s23 }
   0xa   :  { %p4776_p3 = por %p4775_p2, %p4774_p1 }
   0xc   :  { %p4777_p4 = pnand %p4776_p3, %p4770_p0 }
   0xe   :  { %4780 = shalt.err (!%p4777_p4)
}
   0xf   :  { %44 = dma.hbm_to_vmem [thread:$0]  %s5647_s1, 128, %s42_s22, [#allocation6]  }
  0x10   :  { %s4954_s26 = smov [#allocation8]   ;;  %s4955_s28 = smov [#allocation11]  }
  0x11   :  { %s62_s27 = sshll.u32 %s4954_s26, 4  ;;  %s86_s29 = sshll.u32 %s4955_s28, 4  ;;  %s63_s27 = int_to_ptr.vmem [resolvable:$true] %s62_s27  ;;  %s87_s29 = int_to_ptr.vmem [resolvable:$true] %s86_s29 }
  0x12   :  { %s4789_s30 = scalar_lea.vmem %s63_s27, 1024  ;;  %p4794_p6 = scmp.lt.s32.totalorder %s63_s27, %s63_s27 }
  0x13   :  { %p4790_p5 = scmp.ne.s32.totalorder %s63_s27, %s4789_s30  ;;  %p4795_p7 = scmp.lt.s32.totalorder %s4789_s30, %s4789_s30 }
  0x15   :  { %p4796_p8 = por %p4795_p7, %p4794_p6 }
  0x17   :  { %p4797_p9 = pnand %p4796_p8, %p4790_p5 }
  0x19   :  { %4800 = shalt.err (!%p4797_p9)
}
  0x1a   :  { %s4956_s13 = smov 128   ;;  %s4957_s14 = smov 8  }
  0x1b   :  { %68 = dma.hbm_to_vmem [thread:$0]  %s5649_s3, 1024, %s63_s27, [#allocation9], %s4956_s13, %s4956_s13, %s4957_s14  }
  0x1c   :  { %s4809_s1 = scalar_lea.vmem %s87_s29, 512  ;;  %p4814_p11 = scmp.lt.s32.totalorder %s87_s29, %s87_s29 }
  0x1d   :  { %p4810_p10 = scmp.ne.s32.totalorder %s87_s29, %s4809_s1  ;;  %p4815_p12 = scmp.lt.s32.totalorder %s4809_s1, %s4809_s1 }
  0x1f   :  { %p4816_p13 = por %p4815_p12, %p4814_p11 }
  0x21   :  { %p4817_p0 = pnand %p4816_p13, %p4810_p10 }
  0x23   :  { %4820 = shalt.err (!%p4817_p0)
}
  0x24   :  { %92 = dma.hbm_to_vmem [thread:$0]  %s5651_s5, 512, %s87_s29, [#allocation12], %s4956_s13, %s4956_s13, %s4957_s14  }
  0x25   :  { %s4958_s19 = smov [#allocation2]   ;;  %s4959_s21 = smov [#allocation7]  }
  0x26   :  { %s28_s20 = sshll.u32 %s4958_s19, 4  ;;  %s50_s3 = sshll.u32 %s4959_s21, 4  ;;  %s29_s20 = int_to_ptr.vmem [resolvable:$true] %s28_s20  ;;  %s51_s3 = int_to_ptr.vmem [resolvable:$true] %s50_s3 }
  0x27   :  { %s4829_s22 = scalar_lea.vmem %s29_s20, 256  ;;  %p4834_p2 = scmp.lt.s32.totalorder %s29_s20, %s29_s20 }
  0x28   :  { %p4830_p1 = scmp.ne.s32.totalorder %s29_s20, %s4829_s22  ;;  %p4835_p3 = scmp.lt.s32.totalorder %s4829_s22, %s4829_s22 }
  0x2a   :  { %p4836_p4 = por %p4835_p3, %p4834_p2 }
  0x2c   :  { %p4837_p5 = pnand %p4836_p4, %p4830_p1 }
  0x2e   :  { %4840 = shalt.err (!%p4837_p5)
}
  0x2f   :  { %34 = dma.hbm_to_vmem [thread:$0]  %s5646_s0, 256, %s29_s20, [#allocation3], %s4956_s13, %s4956_s13, %s4957_s14  }
  0x30   :  { %s4849_s5 = scalar_lea.vmem %s51_s3, 1024  ;;  %p4854_p7 = scmp.lt.s32.totalorder %s51_s3, %s51_s3 }
  0x31   :  { %p4850_p6 = scmp.ne.s32.totalorder %s51_s3, %s4849_s5  ;;  %p4855_p8 = scmp.lt.s32.totalorder %s4849_s5, %s4849_s5 }
  0x33   :  { %p4856_p9 = por %p4855_p8, %p4854_p7 }
  0x35   :  { %p4857_p10 = pnand %p4856_p9, %p4850_p6 }
  0x37   :  { %4860 = shalt.err (!%p4857_p10)
}
  0x38   :  { %56 = dma.hbm_to_vmem [thread:$0]  %s5648_s2, 1024, %s51_s3, [#allocation6], %s4956_s13, %s4956_s13, %s4957_s14  }
  0x39   :  { %s4960_s27 = smov [#allocation10]   ;;  %s4961_s29 = smov [#allocation13]  }
  0x3a   :  { %s74_s28 = sshll.u32 %s4960_s27, 4  ;;  %s98_s0 = sshll.u32 %s4961_s29, 4  ;;  %s75_s28 = int_to_ptr.vmem [resolvable:$true] %s74_s28  ;;  %s99_s0 = int_to_ptr.vmem [resolvable:$true] %s98_s0 }
  0x3b   :  { %s4869_s30 = scalar_lea.vmem %s75_s28, 512  ;;  %p4874_p12 = scmp.lt.s32.totalorder %s75_s28, %s75_s28 }
  0x3c   :  { %p4870_p11 = scmp.ne.s32.totalorder %s75_s28, %s4869_s30  ;;  %p4875_p13 = scmp.lt.s32.totalorder %s4869_s30, %s4869_s30 }
  0x3e   :  { %p4876_p0 = por %p4875_p13, %p4874_p12 }
  0x40   :  { %p4877_p1 = pnand %p4876_p0, %p4870_p11 }
  0x42   :  { %4880 = shalt.err (!%p4877_p1)
}
  0x43   :  { %80 = dma.hbm_to_vmem [thread:$0]  %s5650_s4, 512, %s75_s28, [#allocation9], %s4956_s13, %s4956_s13, %s4957_s14  }
  0x44   :  { %s4889_s2 = scalar_lea.vmem %s99_s0, 512  ;;  %p4894_p3 = scmp.lt.s32.totalorder %s99_s0, %s99_s0 }
  0x45   :  { %p4890_p2 = scmp.ne.s32.totalorder %s99_s0, %s4889_s2  ;;  %p4895_p4 = scmp.lt.s32.totalorder %s4889_s2, %s4889_s2 }
  0x47   :  { %p4896_p5 = por %p4895_p4, %p4894_p3 }
  0x49   :  { %p4897_p6 = pnand %p4896_p5, %p4890_p2 }
  0x4b   :  { %4900 = shalt.err (!%p4897_p6)
}
  0x4c   :  { %104 = dma.hbm_to_vmem [thread:$0]  %s5652_s6, 512, %s99_s0, [#allocation12], %s4956_s13, %s4956_s13, %s4957_s14  }
  0x4d   :  { %s4962_s18 = smov [#allocation14]  }
  0x4e   :  { %s112_s19 = sshll.u32 %s4962_s18, 4  ;;  %s113_s19 = int_to_ptr.vmem [resolvable:$true] %s112_s19 }
  0x4f   :  { %s4909_s20 = scalar_lea.vmem %s113_s19, 2048  ;;  %p4914_p8 = scmp.lt.s32.totalorder %s113_s19, %s113_s19 }
  0x50   :  { %p4910_p7 = scmp.ne.s32.totalorder %s113_s19, %s4909_s20  ;;  %p4915_p9 = scmp.lt.s32.totalorder %s4909_s20, %s4909_s20 }
  0x52   :  { %p4916_p10 = por %p4915_p9, %p4914_p8 }
  0x54   :  { %p4917_p11 = pnand %p4916_p10, %p4910_p7 }
  0x56   :  { %4920 = shalt.err (!%p4917_p11)
}
  0x57   :  { %118 = dma.hbm_to_vmem [thread:$0]  %s5654_s8, 2048, %s113_s19, [#allocation15], %s4956_s13, %s4956_s13, %s4957_s14  }
  0x58   :  { %4941 = dma.done.wait [#allocation3], 256  }
  0x59   :  { %4942 = vsyncadd [#allocation3], 4294967040 }
  0x5a   :  { %4943 = dma.done.wait [#allocation6], 1152  }
  0x5b   :  { %4944 = vsyncadd [#allocation6], 4294966144 }
  0x5c   :  { %4945 = dma.done.wait [#allocation9], 1536  }
  0x5d   :  { %4946 = vsyncadd [#allocation9], 4294965760 }
  0x5e   :  { %4947 = dma.done.wait [#allocation12], 1024  }
  0x5f   :  { %4948 = vsyncadd [#allocation12], 4294966272 }
  0x60   :  { %4949 = dma.done.wait [#allocation15], 2048  }
  0x61   :  { %4950 = vsyncadd [#allocation15], 4294965248  ;;  %v157_v0 = vld [vmem:[#allocation10 + $0x18] sm:$0xff]  ;;  %v156_v1 = vld [vmem:[#allocation10 + $0x10] sm:$0xff]  ;;  %vm158_vm0 = vcmask 261120   ;;  %s4963_s6 = smov 56   ;;  %v265_v14 = vlaneseq }
  0x62   :  { %4431 = vmatprep.subr.mxu0 %v157_v0  ;;  %v149_v2 = vld [vmem:[#allocation2] sm:$0xff]  ;;  %v150_v4 = vld [vmem:[#allocation2 + $0x8] sm:$0xff]  ;;  %v151_v5 = vld [vmem:[#allocation5] sm:$0xff]  ;;  %s4964_s8 = smov 104   ;;  %s4965_s3 = smov 80   ;;  %v4966_v11 = vmov 0.0  }
  0x63   :  { %4432 = vmatpush3.msra.mxu0 %v157_v0  ;;  %v155_v3 = vld [vmem:[#allocation10 + $0x8] sm:$0xff]  ;;  %v5085_v6 = vadd.f32 %v151_v5, %v149_v2  ;;  %v154_v7 = vld [vmem:[#allocation10] sm:$0xff]  ;;  %v5087_v8 = vadd.f32 %v151_v5, %v150_v4  ;;  %4467 = vmatprep.subr.mxu1 %v4966_v11  ;;  %v4967_v12 = vmov 1983009808   ;;  %v4968_v15 = vmov 1934713408  }
  0x64   :  { %4433 = vmatprep.subr.mxu0 %v156_v1  ;;  %v263_v13 = vunpack.c.l.s4 %v4967_v12  ;;  %v295_v16 = vunpack.c.l.s4 %v4968_v15  ;;  %v5096_v18 = vshrl.u32 %v265_v14, 7  ;;  %s4969_s22 = smov 120   ;;  %vm4970_vm1 = vmmov 0   ;;  %s4971_s23 = smov 112  }
  0x65   :  { %4434 = vmatpush3.msra.mxu0 %v156_v1  ;;  %4439 = vmatprep.mubr.msk.f32.mxu0 %vm158_vm0, %v5085_v6  ;;  %vm548_vm2 = vcmask 64512   ;;  %s4972_s24 = smov 16   ;;  %s4973_s5 = smov 24   ;;  %vm2174_vm4 = vcmask 130048   ;;  %vm2177_vm5 = vcmask 195584  }
  0x66   :  { %4435 = vmatprep.subr.mxu0 %v155_v3  ;;  %v264_v17 = vunpack.c.0.s8 %v263_v13  ;;  %v296_v21 = vunpack.c.0.s8 %v295_v16  ;;  %4469 = vmatprep.mubr.msk.f32.mxu1 %vm4970_vm1, %v4966_v11 }
  0x67   :  { %4436 = vmatpush3.msra.mxu0 %v155_v3 }
  0x68   :  { %4437 = vmatprep.subr.mxu0 %v154_v7  ;;  %v5099_v22 = vsub.s32 %v264_v17, %v5096_v18  ;;  %v5102_v29 = vsub.s32 %v296_v21, %v5096_v18 }
  0x69   :  { %4438 = vmatpush3.msra.mxu0 %v154_v7 }
  0x6a   :  { %4440 = vmatmul.mubr.msk.f32.vlgmr.msra.gmra.mxu0 %vm158_vm0, %v5087_v8  ;;  %4442 = vmatprep.subr.mxu0 %v4966_v11 }
  0x6b   :  { %4444 = vmatprep.mubr.msk.f32.mxu0 %vm4970_vm1, %v4966_v11 }
 0x12a   :  { %v4441_v9 = vpop.f32.mrf.mxu0 }
 0x12c   :  { %v231_v10 = vpop.f32.mrf.mxu0 }
 0x12d   :  { %254 = vrot.lane.b32.xlu1 %v231_v10, %s4963_s6  ;;  %242 = vrot.lane.b32.xlu0 %v231_v10, %s4964_s8 }
 0x131   :  { %244 = vrot.lane.b32.xlu1 %v4441_v9, %s4964_s8  ;;  %248 = vrot.lane.b32.xlu0 %v231_v10, %s4965_s3  ;;  %s4974_s8 = smov [#allocation16]  }
 0x135   :  { %256 = vrot.lane.b32.xlu1 %v4441_v9, %s4963_s6  ;;  %250 = vrot.lane.b32.xlu0 %v4441_v9, %s4965_s3  ;;  %s4239_s3 = sshll.u32 %s4974_s8, 4  ;;  %s4240_s3 = int_to_ptr.vmem [resolvable:$true] %s4239_s3 }
 0x136   :  { %p4926_p13 = scmp.lt.s32.totalorder %s4240_s3, %s4240_s3 }
 0x19f   :  { %v255_v19 = vpop.permute.xlu1 %254  ;;  %v243_v20 = vpop.permute.xlu0 %242 }
 0x1a0   :  { %v276_v23 = vcombine.low %v243_v20, %v255_v19  ;;  %v277_v24 = vcombine.high %v243_v20, %v255_v19 }
 0x1a2   :  { %v284_v30 = vrot.slane %v276_v23, %v5099_v22  ;;  %v291_v31 = vrot.slane %v277_v24, %v5099_v22 }
 0x1a3   :  { %v245_v25 = vpop.permute.xlu1 %244  ;;  %v249_v26 = vpop.permute.xlu0 %248 }
 0x1a4   :  { %v260_v27 = vcombine.low %v231_v10, %v249_v26  ;;  %v261_v28 = vcombine.high %v231_v10, %v249_v26 }
 0x1a6   :  { %v268_v32 = vrot.slane %v260_v27, %v5099_v22  ;;  %v275_v33 = vrot.slane %v261_v28, %v5099_v22 }
 0x1a7   :  { %v257_v34 = vpop.permute.xlu1 %256  ;;  %v251_v35 = vpop.permute.xlu0 %250 }
 0x1a8   :  { %v292_v36 = vcombine.low %v268_v32, %v284_v30  ;;  %v293_v37 = vcombine.high %v268_v32, %v284_v30  ;;  %v308_v38 = vcombine.low %v275_v33, %v291_v31  ;;  %v309_v39 = vcombine.high %v275_v33, %v291_v31 }
 0x1a9   :  { %v344_v40 = vcombine.low %v245_v25, %v257_v34  ;;  %v345_v41 = vcombine.high %v245_v25, %v257_v34  ;;  %v328_v42 = vcombine.low %v4441_v9, %v251_v35  ;;  %v329_v43 = vcombine.high %v4441_v9, %v251_v35 }
 0x1aa   :  { %v300_v44 = vrot.slane %v292_v36, %v5102_v29  ;;  %v307_v45 = vrot.slane %v293_v37, %v5102_v29  ;;  %v316_v46 = vrot.slane %v308_v38, %v5102_v29  ;;  %v323_v47 = vrot.slane %v309_v39, %v5102_v29 }
 0x1ab   :  { %v352_v48 = vrot.slane %v344_v40, %v5099_v22  ;;  %v359_v49 = vrot.slane %v345_v41, %v5099_v22  ;;  %v336_v50 = vrot.slane %v328_v42, %v5099_v22  ;;  %v343_v51 = vrot.slane %v329_v43, %v5099_v22 }
 0x1ac   :  { %v396_v52 = vcombine.low %v300_v44, %v307_v45  ;;  %v4257_v53 = vcombine.high %v300_v44, %v307_v45  ;;  %v412_v54 = vcombine.low %v316_v46, %v323_v47  ;;  %v4258_v55 = vcombine.high %v316_v46, %v323_v47 }
 0x1ad   :  { %v360_v56 = vcombine.low %v336_v50, %v352_v48  ;;  %v361_v57 = vcombine.high %v336_v50, %v352_v48  ;;  %v376_v58 = vcombine.low %v343_v51, %v359_v49  ;;  %v377_v59 = vcombine.high %v343_v51, %v359_v49 }
 0x1ae   :  { %v403_v60 = vrot.slane %v396_v52, %v5099_v22  ;;  %v411_v61 = vrot.slane %v4257_v53, %v5099_v22  ;;  %v419_v62 = vrot.slane %v412_v54, %v5099_v22  ;;  %v427_v63 = vrot.slane %v4258_v55, %v5099_v22 }
 0x1af   :  { %v368_v0 = vrot.slane %v360_v56, %v5102_v29  ;;  %v375_v1 = vrot.slane %v361_v57, %v5102_v29  ;;  %v384_v2 = vrot.slane %v376_v58, %v5102_v29  ;;  %v391_v3 = vrot.slane %v377_v59, %v5102_v29 }
 0x1b0   :  { %v428_v4 = vcombine.low %v403_v60, %v411_v61  ;;  %v444_v5 = vcombine.low %v419_v62, %v427_v63  ;;  %v429_v7 = vcombine.high %v403_v60, %v411_v61  ;;  %v445_v9 = vcombine.high %v419_v62, %v427_v63 }
 0x1b1   :  { %v464_v10 = vcombine.low %v368_v0, %v375_v1  ;;  %v4259_v12 = vcombine.high %v368_v0, %v375_v1  ;;  %v480_v13 = vcombine.low %v384_v2, %v391_v3  ;;  %v4260_v15 = vcombine.high %v384_v2, %v391_v3 }
 0x1b2   :  { %v436_v16 = vrot.slane %v428_v4, %v5102_v29  ;;  %v452_v17 = vrot.slane %v444_v5, %v5102_v29  ;;  %v443_v19 = vrot.slane %v429_v7, %v5102_v29  ;;  %v459_v20 = vrot.slane %v445_v9, %v5102_v29 }
 0x1b3   :  { %v471_v21 = vrot.slane %v464_v10, %v5099_v22  ;;  %v479_v23 = vrot.slane %v4259_v12, %v5099_v22  ;;  %v487_v24 = vrot.slane %v480_v13, %v5099_v22  ;;  %v495_v25 = vrot.slane %v4260_v15, %v5099_v22 }
 0x1b4   :  { %v5132_v26 = vcombine.high %v436_v16, %v452_v17  ;;  %v5134_v27 = vcombine.low %v436_v16, %v452_v17  ;;  %v5138_v31 = vcombine.high %v443_v19, %v459_v20  ;;  %v5140_v32 = vcombine.low %v443_v19, %v459_v20 }
 0x1b5   :  { %v496_v28 = vcombine.low %v471_v21, %v479_v23  ;;  %v512_v30 = vcombine.low %v487_v24, %v495_v25  ;;  %v497_v35 = vcombine.high %v471_v21, %v479_v23  ;;  %v513_v36 = vcombine.high %v487_v24, %v495_v25 }
 0x1b6   :  { %625 = vrot.lane.b32.xlu1 %v5132_v26, %s4969_s22  ;;  %546 = vrot.lane.b32.xlu0 %v5134_v27, %s4969_s22  ;;  %v537_v45 = vmul.f32 0.17677669, %v5134_v27  ;;  %v538_v47 = vmul.f32 0.17677669, %v5132_v26  ;;  %v539_v50 = vmul.f32 0.17677669, %v5140_v32 }
 0x1b7   :  { %v504_v33 = vrot.slane %v496_v28, %v5102_v29  ;;  %v520_v34 = vrot.slane %v512_v30, %v5102_v29  ;;  %v511_v39 = vrot.slane %v497_v35, %v5102_v29  ;;  %v527_v40 = vrot.slane %v513_v36, %v5102_v29 }
 0x1b8   :  { %v540_v54 = vmul.f32 0.17677669, %v5138_v31  ;;  %v535_v59 = vand.u32 127, %v265_v14 }
 0x1b9   :  { %v5150_v37 = vcombine.high %v504_v33, %v520_v34  ;;  %v5152_v38 = vcombine.low %v504_v33, %v520_v34  ;;  %v5158_v41 = vcombine.high %v511_v39, %v527_v40  ;;  %v5160_v42 = vcombine.low %v511_v39, %v527_v40 }
 0x1ba   :  { %781 = vrot.lane.b32.xlu1 %v5138_v31, %s4969_s22  ;;  %703 = vrot.lane.b32.xlu0 %v5140_v32, %s4969_s22  ;;  %vm5214_vm3 = vcmp.ge.s32.totalorder %v5096_v18, %v535_v59 }
 0x1bb   :  { %v542_v51 = vmul.f32 0.17677669, %v5150_v37  ;;  %v544_v55 = vmul.f32 0.17677669, %v5158_v41  ;;  %v541_v56 = vmul.f32 0.17677669, %v5152_v38 }
 0x1bc   :  { %v543_v58 = vmul.f32 0.17677669, %v5160_v42 }
 0x1be   :  { %937 = vrot.lane.b32.xlu1 %v5150_v37, %s4969_s22  ;;  %859 = vrot.lane.b32.xlu0 %v5152_v38, %s4969_s22 }
 0x1c2   :  { %1093 = vrot.lane.b32.xlu1 %v5158_v41, %s4969_s22  ;;  %1015 = vrot.lane.b32.xlu0 %v5160_v42, %s4969_s22  ;;  %s4921_s22 = scalar_lea.vmem %s4240_s3, 256 }
 0x1c3   :  { %p4922_p12 = scmp.ne.s32.totalorder %s4240_s3, %s4921_s22  ;;  %p4927_p0 = scmp.lt.s32.totalorder %s4921_s22, %s4921_s22 }
 0x1c5   :  { %p4928_p1 = por %p4927_p0, %p4926_p13 }
 0x1c7   :  { %p4929_p2 = pnand %p4928_p1, %p4922_p12 }
 0x228   :  { %v626_v43 = vpop.permute.xlu1 %625  ;;  %v547_v44 = vpop.permute.xlu0 %546 }
 0x229   :  { %4443 = vmatpush3.xpose.msk.msra.mxu0 %vm548_vm2, %v547_v44 }
 0x22a   :  { %4447 = vmatprep.subr.mxu0 %v4966_v11 }
 0x22c   :  { %v782_v46 = vpop.permute.xlu1 %781  ;;  %4445 = vmatmul.mubr.msk.f32.vlgmr.msra.gmra.mxu0 %vm548_vm2, %v537_v45  ;;  %v704_v48 = vpop.permute.xlu0 %703 }
 0x22d   :  { %4448 = vmatpush3.xpose.msk.msra.mxu0 %vm548_vm2, %v626_v43  ;;  %4449 = vmatprep.mubr.msk.f32.mxu0 %vm4970_vm1, %v4966_v11 }
 0x22e   :  { %4452 = vmatprep.subr.mxu0 %v4966_v11 }
 0x230   :  { %v938_v49 = vpop.permute.xlu1 %937  ;;  %4450 = vmatmul.mubr.msk.f32.vlgmr.msra.gmra.mxu0 %vm548_vm2, %v538_v47  ;;  %v860_v53 = vpop.permute.xlu0 %859 }
 0x231   :  { %4453 = vmatpush3.xpose.msk.msra.mxu0 %vm548_vm2, %v704_v48  ;;  %4468 = vmatpush3.xpose.msk.msra.mxu1 %vm548_vm2, %v938_v49 }
 0x232   :  { %4454 = vmatprep.mubr.msk.f32.mxu0 %vm4970_vm1, %v4966_v11  ;;  %4477 = vmatprep.subr.mxu1 %v4966_v11 }
 0x233   :  { %4457 = vmatprep.subr.mxu0 %v4966_v11 }
 0x234   :  { %v1094_v52 = vpop.permute.xlu1 %1093  ;;  %4455 = vmatmul.mubr.msk.f32.vlgmr.msra.gmra.mxu0 %vm548_vm2, %v539_v50  ;;  %4470 = vmatmul.mubr.msk.f32.vlgmr.msra.gmra.mxu1 %vm548_vm2, %v542_v51  ;;  %v1016_v57 = vpop.permute.xlu0 %1015 }
 0x235   :  { %4458 = vmatpush3.xpose.msk.msra.mxu0 %vm548_vm2, %v782_v46  ;;  %4478 = vmatpush3.xpose.msk.msra.mxu1 %vm548_vm2, %v1094_v52 }
 0x236   :  { %4459 = vmatprep.mubr.msk.f32.mxu0 %vm4970_vm1, %v4966_v11  ;;  %4479 = vmatprep.mubr.msk.f32.mxu1 %vm4970_vm1, %v4966_v11 }
 0x237   :  { %4462 = vmatprep.subr.mxu0 %v4966_v11  ;;  %4487 = vmatprep.subr.mxu1 %v4966_v11 }
 0x238   :  { %4460 = vmatmul.mubr.msk.f32.vlgmr.msra.gmra.mxu0 %vm548_vm2, %v540_v54  ;;  %4480 = vmatmul.mubr.msk.f32.vlgmr.msra.gmra.mxu1 %vm548_vm2, %v544_v55 }
 0x239   :  { %4463 = vmatpush3.xpose.msk.msra.mxu0 %vm548_vm2, %v860_v53  ;;  %4464 = vmatprep.mubr.msk.f32.mxu0 %vm4970_vm1, %v4966_v11 }
 0x23a   :  { %4472 = vmatprep.subr.mxu0 %v4966_v11  ;;  %4489 = vmatprep.mubr.msk.f32.mxu1 %vm4970_vm1, %v4966_v11 }
 0x23c   :  { %4465 = vmatmul.mubr.msk.f32.vlgmr.msra.gmra.mxu0 %vm548_vm2, %v541_v56 }
 0x23d   :  { %4473 = vmatpush3.xpose.msk.msra.mxu0 %vm548_vm2, %v1016_v57  ;;  %4474 = vmatprep.mubr.msk.f32.mxu0 %vm4970_vm1, %v4966_v11 }
 0x23e   :  { %4482 = vmatprep.subr.mxu0 %v4966_v11 }
 0x240   :  { %4475 = vmatmul.mubr.msk.f32.vlgmr.msra.gmra.mxu0 %vm548_vm2, %v543_v58 }
 0x241   :  { %4484 = vmatprep.mubr.msk.f32.mxu0 %vm4970_vm1, %v4966_v11 }
 0x2ec   :  { %v620_v61 = vpop.f32.mrf.mxu0 }
 0x2ed   :  { %v1172_v62 = vsel %vm5214_vm3, %v620_v61, -1e+30 }
 0x2ee   :  { %v4446_v63 = vpop.f32.mrf.mxu0  ;;  %v1180_v0 = vsel %vm548_vm2, %v1172_v62, -inf }
 0x2ef   :  { %1181 = vmax.xlane.f32.xlu0 %v1180_v0 }
 0x2f0   :  { %v698_v1 = vpop.f32.mrf.mxu0 }
 0x2f1   :  { %v1173_v2 = vsel %vm5214_vm3, %v698_v1, -1e+30 }
 0x2f2   :  { %v4451_v3 = vpop.f32.mrf.mxu0  ;;  %v1183_v14 = vsel %vm548_vm2, %v1173_v2, -inf }
 0x2f3   :  { %1184 = vmax.xlane.f32.xlu1 %v1183_v14 }
 0x2f4   :  { %v776_v18 = vpop.f32.mrf.mxu0  ;;  %v1010_v4 = vpop.f32.mrf.mxu1 }
 0x2f5   :  { %v1174_v5 = vsel %vm5214_vm3, %v776_v18, -1e+30  ;;  %v1177_v20 = vsel %vm5214_vm3, %v1010_v4, -1e+30 }
 0x2f6   :  { %v4456_v7 = vpop.f32.mrf.mxu0  ;;  %v4471_v9 = vpop.f32.mrf.mxu1  ;;  %v1186_v10 = vsel %vm548_vm2, %v1174_v5, -inf  ;;  %v1195_v24 = vsel %vm548_vm2, %v1177_v20, -inf }
 0x2f7   :  { %1187 = vmax.xlane.f32.xlu0 %v1186_v10 }
 0x2f8   :  { %v854_v12 = vpop.f32.mrf.mxu0  ;;  %v1166_v13 = vpop.f32.mrf.mxu1 }
 0x2f9   :  { %v1175_v15 = vsel %vm5214_vm3, %v854_v12, -1e+30  ;;  %v1179_v25 = vsel %vm5214_vm3, %v1166_v13, -1e+30 }
 0x2fa   :  { %v4461_v16 = vpop.f32.mrf.mxu0  ;;  %v4481_v17 = vpop.f32.mrf.mxu1  ;;  %v1189_v19 = vsel %vm548_vm2, %v1175_v15, -inf  ;;  %v1201_v33 = vsel %vm548_vm2, %v1179_v25, -inf }
 0x2fb   :  { %1190 = vmax.xlane.f32.xlu0 %v1189_v19 }
 0x2fc   :  { %v932_v21 = vpop.f32.mrf.mxu0 }
 0x2fd   :  { %v1176_v34 = vsel %vm5214_vm3, %v932_v21, -1e+30 }
 0x2fe   :  { %v4466_v23 = vpop.f32.mrf.mxu0  ;;  %v1192_v35 = vsel %vm548_vm2, %v1176_v34, -inf }
 0x2ff   :  { %1196 = vmax.xlane.f32.xlu0 %v1195_v24 }
 0x300   :  { %v1088_v28 = vpop.f32.mrf.mxu0 }
 0x301   :  { %v1178_v36 = vsel %vm5214_vm3, %v1088_v28, -1e+30 }
 0x302   :  { %v4476_v30 = vpop.f32.mrf.mxu0  ;;  %v1198_v39 = vsel %vm548_vm2, %v1178_v36, -inf }
 0x303   :  { %1202 = vmax.xlane.f32.xlu0 %v1201_v33 }
 0x304   :  { %1268 = vrot.lane.b32.xlu1 %v5134_v27, %s4971_s23 }
 0x308   :  { %1420 = vrot.lane.b32.xlu1 %v5140_v32, %s4971_s23 }
 0x319   :  { %1344 = vrot.lane.b32.xlu0 %v5132_v26, %s4971_s23 }
 0x32c   :  { %1193 = vmax.xlane.f32.xlu1 %v1192_v35 }
 0x330   :  { %1199 = vmax.xlane.f32.xlu1 %v1198_v39 }
 0x341   :  { %1496 = vrot.lane.b32.xlu1 %v5138_v31, %s4971_s23 }
 0x378   :  { %v1182_v40 = vpop.xlane.xlu0 %1181 }
 0x379   :  { %v1204_v43 = vsub.f32 %v1172_v62, %v1182_v40 }
 0x37b   :  { %v1212_v44 = vmul.f32 1.442695, %v1204_v43 }
 0x37c   :  { %v1185_v45 = vpop.xlane.xlu1 %1184 }
 0x37d   :  { %4681 = vpow2.f32 %v1212_v44  ;;  %v1205_v54 = vsub.f32 %v1173_v2, %v1185_v45 }
 0x37f   :  { %v1214_v59 = vmul.f32 1.442695, %v1205_v54 }
 0x380   :  { %v1269_v46 = vpop.permute.xlu1 %1268  ;;  %v1188_v47 = vpop.xlane.xlu0 %1187 }
 0x381   :  { %v1206_v48 = vsub.f32 %v1174_v5, %v1188_v47  ;;  %4483 = vmatpush3.msra.mxu0 %v1269_v46 }
 0x382   :  { %4492 = vmatprep.subr.mxu0 %v4966_v11 }
 0x383   :  { %v1216_v49 = vmul.f32 1.442695, %v1206_v48 }
 0x384   :  { %v1191_v50 = vpop.xlane.xlu0 %1190  ;;  %v1421_v10 = vpop.permute.xlu1 %1420 }
 0x385   :  { %4683 = vpow2.f32 %v1216_v49  ;;  %v1207_v60 = vsub.f32 %v1175_v15, %v1191_v50 }
 0x387   :  { %v1218_v0 = vmul.f32 1.442695, %v1207_v60  ;;  %v2309_v60 = vld [vmem:[#allocation7 + $0x8] sm:$0xff] }
 0x388   :  { %v1197_v51 = vpop.xlane.xlu0 %1196 }
 0x389   :  { %v1209_v52 = vsub.f32 %v1177_v20, %v1197_v51 }
 0x38a   :  { %v4682_v53 = vpop.eup %4681 }
 0x38b   :  { %v1222_v55 = vmul.f32 1.442695, %v1209_v52  ;;  %v1228_v56 = vsel %vm548_vm2, %v4682_v53, 0.0 }
 0x38c   :  { %1229 = vadd.xlane.f32.xlu1 %v1228_v56  ;;  %v1203_v57 = vpop.xlane.xlu0 %1202 }
 0x38d   :  { %4685 = vpow2.f32 %v1222_v55  ;;  %v1211_v58 = vsub.f32 %v1179_v25, %v1203_v57 }
 0x38f   :  { %v1226_v61 = vmul.f32 1.442695, %v1211_v58  ;;  %v2308_v58 = vld [vmem:[#allocation7] sm:$0xff] }
 0x390   :  { %v1345_v62 = vpop.permute.xlu0 %1344 }
 0x391   :  { %4687 = vpow2.f32 %v1226_v61  ;;  %4488 = vmatpush3.msra.mxu1 %v1345_v62 }
 0x392   :  { %v4684_v63 = vpop.eup %4683  ;;  %4497 = vmatprep.subr.mxu1 %v4966_v11  ;;  %4689 = vpow2.f32 %v1214_v59  ;;  %v2324_v59 = vmul.f32 0.35355338, %v5134_v27 }
 0x393   :  { %v1234_v1 = vsel %vm548_vm2, %v4684_v63, 0.0  ;;  %4691 = vpow2.f32 %v1218_v0  ;;  %v2311_v0 = vld [vmem:[#allocation7 + $0x18] sm:$0xff] }
 0x394   :  { %1235 = vadd.xlane.f32.xlu1 %v1234_v1 }
 0x39a   :  { %v5254_v2 = vpop.eup %4685 }
 0x39b   :  { %v1243_v3 = vsel %vm548_vm2, %v5254_v2, 0.0 }
 0x39c   :  { %1244 = vadd.xlane.f32.xlu0 %v1243_v3  ;;  %v2313_v3 = vld [vmem:[#allocation7 + $0x28] sm:$0xff] }
 0x39e   :  { %v5258_v14 = vpop.eup %4687 }
 0x39f   :  { %v1249_v18 = vsel %vm548_vm2, %v5258_v14, 0.0  ;;  %v4690_v4 = vpop.eup %4689 }
 0x3a0   :  { %1250 = vadd.xlane.f32.xlu0 %v1249_v18  ;;  %v1231_v5 = vsel %vm548_vm2, %v4690_v4, 0.0  ;;  %v4692_v7 = vpop.eup %4691  ;;  %v2315_v18 = vld [vmem:[#allocation7 + $0x38] sm:$0xff] }
 0x3a1   :  { %v1237_v9 = vsel %vm548_vm2, %v4692_v7, 0.0 }
 0x3a4   :  { %1232 = vadd.xlane.f32.xlu0 %v1231_v5 }
 0x3a5   :  { %1648 = vrot.lane.b32.xlu1 %v5150_v37, %s4971_s23 }
 0x3a8   :  { %1238 = vadd.xlane.f32.xlu0 %v1237_v9 }
 0x3b5   :  { %v1194_v12 = vpop.xlane.xlu1 %1193 }
 0x3b6   :  { %v1208_v13 = vsub.f32 %v1176_v34, %v1194_v12 }
 0x3b8   :  { %v1220_v15 = vmul.f32 1.442695, %v1208_v13 }
 0x3b9   :  { %v1200_v16 = vpop.xlane.xlu1 %1199 }
 0x3ba   :  { %4693 = vpow2.f32 %v1220_v15  ;;  %v1210_v17 = vsub.f32 %v1178_v36, %v1200_v16 }
 0x3bc   :  { %v1224_v19 = vmul.f32 1.442695, %v1210_v17 }
 0x3bd   :  { %v1497_v25 = vpop.permute.xlu1 %1496 }
 0x3be   :  { %4695 = vpow2.f32 %v1224_v19  ;;  %1572 = vrot.lane.b32.xlu0 %v5152_v38, %s4971_s23 }
 0x3c2   :  { %1724 = vrot.lane.b32.xlu0 %v5160_v42, %s4971_s23 }
 0x3c7   :  { %v5270_v20 = vpop.eup %4693 }
 0x3c8   :  { %v1240_v21 = vsel %vm548_vm2, %v5270_v20, 0.0 }
 0x3c9   :  { %1241 = vadd.xlane.f32.xlu1 %v1240_v21 }
 0x3cb   :  { %v5274_v23 = vpop.eup %4695 }
 0x3cc   :  { %v1246_v24 = vsel %vm548_vm2, %v5274_v23, 0.0 }
 0x3cd   :  { %1247 = vadd.xlane.f32.xlu1 %v1246_v24 }
 0x3de   :  { %1800 = vrot.lane.b32.xlu1 %v5158_v41, %s4971_s23 }
 0x415   :  { %v1230_v28 = vpop.xlane.xlu1 %1229 }
 0x416   :  { %4697 = vrcp.f32 %v1230_v28 }
 0x41d   :  { %v1236_v30 = vpop.xlane.xlu1 %1235 }
 0x41e   :  { %4699 = vrcp.f32 %v1236_v30 }
 0x421   :  { %v1649_v51 = vpop.permute.xlu1 %1648 }
 0x423   :  { %v4698_v33 = vpop.eup %4697 }
 0x424   :  { %v1260_v34 = vmul.f32 %v4698_v33, %v4682_v53 }
 0x425   :  { %v1245_v35 = vpop.xlane.xlu0 %1244 }
 0x426   :  { %4485 = vmatmul.mubr.msk.f32.vlgmr.msra.gmra.mxu0 %vm548_vm2, %v1260_v34 }
 0x427   :  { %4493 = vmatpush3.msra.mxu0 %v1421_v10  ;;  %4494 = vmatprep.mubr.msk.f32.mxu0 %vm4970_vm1, %v4966_v11 }
 0x428   :  { %4502 = vmatprep.subr.mxu0 %v4966_v11 }
 0x429   :  { %v1251_v36 = vpop.xlane.xlu0 %1250 }
 0x42b   :  { %v4700_v39 = vpop.eup %4699 }
 0x42c   :  { %v1262_v40 = vmul.f32 %v4700_v39, %v4684_v63  ;;  %v2325_v63 = vmul.f32 0.35355338, %v5132_v26  ;;  %v2327_v26 = vmul.f32 0.35355338, %v5138_v31  ;;  %v2331_v31 = vmul.f32 0.35355338, %v5158_v41 }
 0x42d   :  { %v1233_v43 = vpop.xlane.xlu0 %1232 }
 0x42e   :  { %4701 = vrcp.f32 %v1233_v43  ;;  %4495 = vmatmul.mubr.msk.f32.vlgmr.msra.gmra.mxu0 %vm548_vm2, %v1262_v40 }
 0x42f   :  { %4504 = vmatprep.mubr.msk.f32.mxu0 %vm4970_vm1, %v4966_v11 }
 0x431   :  { %v1239_v44 = vpop.xlane.xlu0 %1238 }
 0x432   :  { %4703 = vrcp.f32 %v1239_v44 }
 0x433   :  { %4705 = vrcp.f32 %v1245_v35 }
 0x434   :  { %4707 = vrcp.f32 %v1251_v36 }
 0x435   :  { %v1573_v45 = vpop.permute.xlu0 %1572 }
 0x436   :  { %4503 = vmatpush3.msra.mxu0 %v1573_v45 }
 0x437   :  { %4512 = vmatprep.subr.mxu0 %v4966_v11 }
 0x439   :  { %v1725_v1 = vpop.permute.xlu0 %1724 }
 0x43b   :  { %v4702_v46 = vpop.eup %4701 }
 0x43c   :  { %v1261_v47 = vmul.f32 %v4702_v46, %v4690_v4 }
 0x43e   :  { %4490 = vmatmul.mubr.msk.f32.vlgmr.msra.gmra.mxu1 %vm548_vm2, %v1261_v47 }
 0x43f   :  { %v4704_v48 = vpop.eup %4703  ;;  %4498 = vmatpush3.msra.mxu1 %v1497_v25  ;;  %4499 = vmatprep.mubr.msk.f32.mxu1 %vm4970_vm1, %v4966_v11 }
 0x440   :  { %4507 = vmatprep.subr.mxu1 %v4966_v11  ;;  %v1263_v49 = vmul.f32 %v4704_v48, %v4692_v7  ;;  %v4706_v50 = vpop.eup %4705 }
 0x441   :  { %v1265_v52 = vmul.f32 %v4706_v50, %v5254_v2  ;;  %v4708_v55 = vpop.eup %4707 }
 0x442   :  { %4500 = vmatmul.mubr.msk.f32.vlgmr.msra.gmra.mxu1 %vm548_vm2, %v1263_v49  ;;  %v1267_v57 = vmul.f32 %v4708_v55, %v5258_v14  ;;  %v2329_v14 = vmul.f32 0.35355338, %v5150_v37 }
 0x443   :  { %4508 = vmatpush3.msra.mxu1 %v1649_v51  ;;  %4509 = vmatprep.mubr.msk.f32.mxu1 %vm4970_vm1, %v4966_v11 }
 0x444   :  { %4517 = vmatprep.subr.mxu1 %v4966_v11 }
 0x446   :  { %4510 = vmatmul.mubr.msk.f32.vlgmr.msra.gmra.mxu1 %vm548_vm2, %v1265_v52 }
 0x447   :  { %4519 = vmatprep.mubr.msk.f32.mxu1 %vm4970_vm1, %v4966_v11 }
 0x452   :  { %v1242_v53 = vpop.xlane.xlu1 %1241 }
 0x453   :  { %4709 = vrcp.f32 %v1242_v53 }
 0x456   :  { %v1248_v54 = vpop.xlane.xlu1 %1247 }
 0x457   :  { %4711 = vrcp.f32 %v1248_v54 }
 0x45a   :  { %v1801_v56 = vpop.permute.xlu1 %1800 }
 0x45b   :  { %4518 = vmatpush3.msra.mxu1 %v1801_v56 }
 0x45c   :  { %4520 = vmatmul.mubr.msk.f32.vlgmr.msra.gmra.mxu1 %vm548_vm2, %v1267_v57  ;;  %4533 = vmatprep.subr.mxu1 %v4966_v11 }
 0x45d   :  { %4534 = vmatpush3.xpose.msk.msra.mxu1 %vm548_vm2, %v2308_v58  ;;  %4535 = vmatprep.mubr.msk.f32.mxu1 %vm4970_vm1, %v4966_v11 }
 0x45e   :  { %4538 = vmatprep.subr.mxu1 %v4966_v11 }
 0x460   :  { %v4710_v61 = vpop.eup %4709  ;;  %4536 = vmatmul.mubr.msk.f32.vlgmr.msra.gmra.mxu1 %vm548_vm2, %v2324_v59 }
 0x461   :  { %4539 = vmatpush3.xpose.msk.msra.mxu1 %vm548_vm2, %v2309_v60  ;;  %v1264_v62 = vmul.f32 %v4710_v61, %v5270_v20  ;;  %4540 = vmatprep.mubr.msk.f32.mxu1 %vm4970_vm1, %v4966_v11 }
 0x462   :  { %4548 = vmatprep.subr.mxu1 %v4966_v11 }
 0x463   :  { %4505 = vmatmul.mubr.msk.f32.vlgmr.msra.gmra.mxu0 %vm548_vm2, %v1264_v62 }
 0x464   :  { %v4712_v27 = vpop.eup %4711  ;;  %4513 = vmatpush3.msra.mxu0 %v1725_v1  ;;  %4541 = vmatmul.mubr.msk.f32.vlgmr.msra.gmra.mxu1 %vm548_vm2, %v2325_v63 }
 0x465   :  { %4549 = vmatpush3.xpose.msk.msra.mxu1 %vm548_vm2, %v2311_v0  ;;  %4514 = vmatprep.mubr.msk.f32.mxu0 %vm4970_vm1, %v4966_v11  ;;  %v1266_v2 = vmul.f32 %v4712_v27, %v5274_v23 }
 0x466   :  { %4550 = vmatprep.mubr.msk.f32.mxu1 %vm4970_vm1, %v4966_v11  ;;  %4558 = vmatprep.subr.mxu1 %v4966_v11 }
 0x467   :  { %4515 = vmatmul.mubr.msk.f32.vlgmr.msra.gmra.mxu0 %vm548_vm2, %v1266_v2 }
 0x468   :  { %4551 = vmatmul.mubr.msk.f32.vlgmr.msra.gmra.mxu1 %vm548_vm2, %v2327_v26 }
 0x469   :  { %4559 = vmatpush3.xpose.msk.msra.mxu1 %vm548_vm2, %v2313_v3  ;;  %4560 = vmatprep.mubr.msk.f32.mxu1 %vm4970_vm1, %v4966_v11 }
 0x46a   :  { %4568 = vmatprep.subr.mxu1 %v4966_v11 }
 0x46c   :  { %4561 = vmatmul.mubr.msk.f32.vlgmr.msra.gmra.mxu1 %vm548_vm2, %v2329_v14 }
 0x46d   :  { %4569 = vmatpush3.xpose.msk.msra.mxu1 %vm548_vm2, %v2315_v18  ;;  %4570 = vmatprep.mubr.msk.f32.mxu1 %vm4970_vm1, %v4966_v11 }
 0x46e   :  { %4578 = vmatprep.subr.mxu1 %v4966_v11 }
 0x470   :  { %4571 = vmatmul.mubr.msk.f32.vlgmr.msra.gmra.mxu1 %vm548_vm2, %v2331_v31 }
 0x471   :  { %4580 = vmatprep.mubr.msk.f32.mxu1 %vm4970_vm1, %v4966_v11 }
 0x4e6   :  { %v1340_v37 = vpop.f32.mrf.mxu0 }
 0x4e8   :  { %v4486_v4 = vpop.f32.mrf.mxu0 }
 0x4ee   :  { %v1492_v5 = vpop.f32.mrf.mxu0 }
 0x4ef   :  { %v1876_v12 = vcombine.low %v1340_v37, %v1492_v5  ;;  %v1877_v13 = vcombine.high %v1340_v37, %v1492_v5 }
 0x4f0   :  { %v4496_v7 = vpop.f32.mrf.mxu0 }
 0x4f1   :  { %v1884_v41 = vrot.slane %v1876_v12, %v5099_v22  ;;  %v1891_v20 = vrot.slane %v1877_v13, %v5099_v22 }
 0x4fe   :  { %v1416_v9 = vpop.f32.mrf.mxu1 }
 0x500   :  { %v4491_v10 = vpop.f32.mrf.mxu1 }
 0x502   :  { %v1568_v15 = vpop.f32.mrf.mxu1 }
 0x503   :  { %v1892_v16 = vcombine.low %v1416_v9, %v1568_v15  ;;  %v1893_v17 = vcombine.high %v1416_v9, %v1568_v15 }
 0x504   :  { %v4501_v19 = vpop.f32.mrf.mxu1 }
 0x505   :  { %v1900_v21 = vrot.slane %v1892_v16, %v5099_v22  ;;  %v1907_v23 = vrot.slane %v1893_v17, %v5099_v22 }
 0x506   :  { %v1720_v24 = vpop.f32.mrf.mxu1 }
 0x507   :  { %v1908_v25 = vcombine.low %v1884_v41, %v1900_v21  ;;  %v1909_v28 = vcombine.high %v1884_v41, %v1900_v21  ;;  %v1924_v30 = vcombine.low %v1891_v20, %v1907_v23  ;;  %v1925_v33 = vcombine.high %v1891_v20, %v1907_v23  ;;  %v2183_v23 = vld [vmem:[#allocation11 + $0x18] sm:$0xff] }
 0x508   :  { %v4511_v34 = vpop.f32.mrf.mxu1  ;;  %4522 = vmatprep.subr.mxu0 %v2183_v23 }
 0x509   :  { %v1916_v35 = vrot.slane %v1908_v25, %v5102_v29  ;;  %v1923_v36 = vrot.slane %v1909_v28, %v5102_v29  ;;  %v1932_v39 = vrot.slane %v1924_v30, %v5102_v29  ;;  %v1939_v40 = vrot.slane %v1925_v33, %v5102_v29  ;;  %4523 = vmatpush3.msra.mxu0 %v2183_v23 }
 0x50b   :  { %v2012_v43 = vcombine.low %v1916_v35, %v1923_v36  ;;  %v4285_v44 = vcombine.high %v1916_v35, %v1923_v36  ;;  %v2028_v45 = vcombine.low %v1932_v39, %v1939_v40  ;;  %v4286_v46 = vcombine.high %v1932_v39, %v1939_v40 }
 0x50d   :  { %v2019_v47 = vrot.slane %v2012_v43, %v5099_v22  ;;  %v2027_v48 = vrot.slane %v4285_v44, %v5099_v22  ;;  %v2035_v49 = vrot.slane %v2028_v45, %v5099_v22  ;;  %v2043_v50 = vrot.slane %v4286_v46, %v5099_v22  ;;  %v2181_v44 = vld [vmem:[#allocation11 + $0x8] sm:$0xff]  ;;  %v2180_v45 = vld [vmem:[#allocation11] sm:$0xff] }
 0x50f   :  { %v2044_v51 = vcombine.low %v2019_v47, %v2027_v48  ;;  %v2060_v52 = vcombine.low %v2035_v49, %v2043_v50  ;;  %v2045_v53 = vcombine.high %v2019_v47, %v2027_v48  ;;  %v2061_v54 = vcombine.high %v2035_v49, %v2043_v50 }
 0x511   :  { %v5354_v55 = vrot.slane %v2044_v51, %v5102_v29  ;;  %v5357_v56 = vrot.slane %v2060_v52, %v5102_v29  ;;  %v2059_v59 = vrot.slane %v2045_v53, %v5102_v29  ;;  %v2075_v60 = vrot.slane %v2061_v54, %v5102_v29 }
 0x513   :  { %v2077_v57 = vcombine.high %v5354_v55, %v5357_v56  ;;  %v2076_v58 = vcombine.low %v5354_v55, %v5357_v56  ;;  %v2078_v61 = vcombine.low %v2059_v59, %v2075_v60  ;;  %v2079_v62 = vcombine.high %v2059_v59, %v2075_v60  ;;  %v2312_v56 = vld [vmem:[#allocation7 + $0x20] sm:$0xff] }
 0x514   :  { %v2326_v55 = vmul.f32 0.35355338, %v5140_v32  ;;  %v2330_v32 = vmul.f32 0.35355338, %v5160_v42 }
 0x515   :  { %2150 = vrot.lane.b32.xlu0 %v2077_v57, %s4957_s14 }
 0x519   :  { %2158 = vrot.lane.b32.xlu0 %v2078_v61, %s4972_s24 }
 0x51c   :  { %v1872_v63 = vpop.f32.mrf.mxu1 }
 0x51d   :  { %2166 = vrot.lane.b32.xlu0 %v2079_v62, %s4973_s5  ;;  %v1960_v14 = vcombine.low %v1720_v24, %v1872_v63  ;;  %v1961_v18 = vcombine.high %v1720_v24, %v1872_v63  ;;  %v2182_v24 = vld [vmem:[#allocation11 + $0x10] sm:$0xff] }
 0x51e   :  { %v4521_v0 = vpop.f32.mrf.mxu1  ;;  %4524 = vmatprep.subr.mxu0 %v2182_v24 }
 0x51f   :  { %v1968_v10 = vrot.slane %v1960_v14, %v5099_v22  ;;  %v1975_v12 = vrot.slane %v1961_v18, %v5099_v22  ;;  %4525 = vmatpush3.msra.mxu0 %v2182_v24 }
 0x520   :  { %v5368_v1 = vpop.f32.mrf.mxu1  ;;  %4526 = vmatprep.subr.mxu0 %v2181_v44 }
 0x521   :  { %4527 = vmatpush3.msra.mxu0 %v2181_v44  ;;  %v2940_v0 = vsel %vm548_vm2, %v5368_v1, -inf }
 0x522   :  { %v4537_v27 = vpop.f32.mrf.mxu1  ;;  %4528 = vmatprep.subr.mxu0 %v2180_v45 }
 0x523   :  { %v1644_v2 = vpop.f32.mrf.mxu0  ;;  %4529 = vmatpush3.msra.mxu0 %v2180_v45 }
 0x524   :  { %v5370_v26 = vpop.f32.mrf.mxu1  ;;  %4543 = vmatprep.subr.mxu0 %v4966_v11 }
 0x525   :  { %v4506_v3 = vpop.f32.mrf.mxu0  ;;  %v2943_v14 = vsel %vm548_vm2, %v5370_v26, -inf }
 0x526   :  { %v4542_v31 = vpop.f32.mrf.mxu1 }
 0x527   :  { %v1796_v37 = vpop.f32.mrf.mxu0 }
 0x528   :  { %v1944_v4 = vcombine.low %v1644_v2, %v1796_v37  ;;  %v1945_v5 = vcombine.high %v1644_v2, %v1796_v37  ;;  %v5372_v7 = vpop.f32.mrf.mxu1 }
 0x529   :  { %v4516_v9 = vpop.f32.mrf.mxu0  ;;  %v2949_v2 = vsel %vm548_vm2, %v5372_v7, -inf }
 0x52a   :  { %v1952_v13 = vrot.slane %v1944_v4, %v5099_v22  ;;  %v1959_v15 = vrot.slane %v1945_v5, %v5099_v22  ;;  %v4552_v16 = vpop.f32.mrf.mxu1 }
 0x52c   :  { %v1976_v17 = vcombine.low %v1952_v13, %v1968_v10  ;;  %v1977_v19 = vcombine.high %v1952_v13, %v1968_v10  ;;  %v1992_v41 = vcombine.low %v1959_v15, %v1975_v12  ;;  %v1993_v20 = vcombine.high %v1959_v15, %v1975_v12  ;;  %v5378_v21 = vpop.f32.mrf.mxu1 }
 0x52e   :  { %v1984_v25 = vrot.slane %v1976_v17, %v5102_v29  ;;  %v1991_v28 = vrot.slane %v1977_v19, %v5102_v29  ;;  %v2000_v30 = vrot.slane %v1992_v41, %v5102_v29  ;;  %v2007_v33 = vrot.slane %v1993_v20, %v5102_v29  ;;  %v4562_v34 = vpop.f32.mrf.mxu1  ;;  %v2310_v17 = vld [vmem:[#allocation7 + $0x10] sm:$0xff] }
 0x52f   :  { %v2314_v41 = vld [vmem:[#allocation7 + $0x30] sm:$0xff] }
 0x530   :  { %v5384_v35 = vpop.f32.mrf.mxu1  ;;  %v2080_v36 = vcombine.low %v1984_v25, %v1991_v28  ;;  %v4287_v39 = vcombine.high %v1984_v25, %v1991_v28  ;;  %v2096_v40 = vcombine.low %v2000_v30, %v2007_v33  ;;  %v4288_v43 = vcombine.high %v2000_v30, %v2007_v33 }
 0x532   :  { %v4572_v46 = vpop.f32.mrf.mxu1  ;;  %v2087_v47 = vrot.slane %v2080_v36, %v5099_v22  ;;  %v2095_v48 = vrot.slane %v4287_v39, %v5099_v22  ;;  %v2103_v49 = vrot.slane %v2096_v40, %v5099_v22  ;;  %v2111_v50 = vrot.slane %v4288_v43, %v5099_v22 }
 0x534   :  { %v2112_v51 = vcombine.low %v2087_v47, %v2095_v48  ;;  %v2128_v52 = vcombine.low %v2103_v49, %v2111_v50  ;;  %v2113_v53 = vcombine.high %v2087_v47, %v2095_v48  ;;  %v2129_v54 = vcombine.high %v2103_v49, %v2111_v50 }
 0x535   :  { %v2961_v47 = vsel %vm548_vm2, %v5384_v35, -inf }
 0x536   :  { %v2120_v57 = vrot.slane %v2112_v51, %v5102_v29  ;;  %v2136_v59 = vrot.slane %v2128_v52, %v5102_v29  ;;  %v2127_v62 = vrot.slane %v2113_v53, %v5102_v29  ;;  %v2143_v63 = vrot.slane %v2129_v54, %v5102_v29 }
 0x538   :  { %v2145_v60 = vcombine.high %v2120_v57, %v2136_v59  ;;  %v2144_v61 = vcombine.low %v2120_v57, %v2136_v59  ;;  %v2146_v27 = vcombine.low %v2127_v62, %v2143_v63  ;;  %v2147_v3 = vcombine.high %v2127_v62, %v2143_v63  ;;  %v2316_v57 = vld [vmem:[#allocation8] sm:$0xff]  ;;  %v2317_v59 = vld [vmem:[#allocation8 + $0x8] sm:$0xff] }
 0x539   :  { %4579 = vmatpush3.msra.mxu1 %v2317_v59 }
 0x53a   :  { %2152 = vrot.lane.b32.xlu1 %v2145_v60, %s4957_s14  ;;  %4588 = vmatprep.subr.mxu1 %v4966_v11 }
 0x53c   :  { %2941 = vmax.xlane.f32.xlu0 %v2940_v0 }
 0x53e   :  { %2160 = vrot.lane.b32.xlu1 %v2146_v27, %s4972_s24 }
 0x540   :  { %2950 = vmax.xlane.f32.xlu0 %v2949_v2 }
 0x542   :  { %2168 = vrot.lane.b32.xlu1 %v2147_v3, %s4973_s5 }
 0x566   :  { %2944 = vmax.xlane.f32.xlu1 %v2943_v14 }
 0x587   :  { %v2151_v18 = vpop.permute.xlu0 %2150 }
 0x588   :  { %v2172_v37 = vsel %vm548_vm2, %v2076_v58, %v2151_v18  ;;  %v2328_v58 = vmul.f32 0.35355338, %v5152_v38 }
 0x58b   :  { %v2159_v31 = vpop.permute.xlu0 %2158 }
 0x58c   :  { %v2175_v4 = vsel %vm2174_vm4, %v2172_v37, %v2159_v31 }
 0x58f   :  { %v2167_v5 = vpop.permute.xlu0 %2166 }
 0x590   :  { %v2178_v9 = vsel %vm2177_vm5, %v2175_v4, %v2167_v5 }
 0x591   :  { %4530 = vmatprep.mubr.msk.f32.mxu0 %vm158_vm0, %v2178_v9 }
 0x5ac   :  { %v2153_v10 = vpop.permute.xlu1 %2152 }
 0x5ad   :  { %v2173_v13 = vsel %vm548_vm2, %v2144_v61, %v2153_v10 }
 0x5b0   :  { %v2161_v12 = vpop.permute.xlu1 %2160 }
 0x5b1   :  { %v2176_v15 = vsel %vm2174_vm4, %v2173_v13, %v2161_v12 }
 0x5b4   :  { %v2169_v16 = vpop.permute.xlu1 %2168 }
 0x5b5   :  { %v2179_v19 = vsel %vm2177_vm5, %v2176_v15, %v2169_v16 }
 0x5b6   :  { %4531 = vmatmul.mubr.msk.f32.vlgmr.msra.gmra.mxu0 %vm158_vm0, %v2179_v19 }
 0x5b7   :  { %4544 = vmatpush3.xpose.msk.msra.mxu0 %vm548_vm2, %v2310_v17  ;;  %4545 = vmatprep.mubr.msk.f32.mxu0 %vm4970_vm1, %v4966_v11 }
 0x5b8   :  { %4553 = vmatprep.subr.mxu0 %v4966_v11 }
 0x5ba   :  { %4546 = vmatmul.mubr.msk.f32.vlgmr.msra.gmra.mxu0 %vm548_vm2, %v2326_v55 }
 0x5bb   :  { %4554 = vmatpush3.xpose.msk.msra.mxu0 %vm548_vm2, %v2312_v56  ;;  %4555 = vmatprep.mubr.msk.f32.mxu0 %vm4970_vm1, %v4966_v11 }
 0x5bc   :  { %4563 = vmatprep.subr.mxu0 %v4966_v11 }
 0x5be   :  { %4556 = vmatmul.mubr.msk.f32.vlgmr.msra.gmra.mxu0 %vm548_vm2, %v2328_v58 }
 0x5bf   :  { %4564 = vmatpush3.xpose.msk.msra.mxu0 %vm548_vm2, %v2314_v41  ;;  %4565 = vmatprep.mubr.msk.f32.mxu0 %vm4970_vm1, %v4966_v11 }
 0x5c0   :  { %4573 = vmatprep.subr.mxu0 %v4966_v11 }
 0x5c2   :  { %4566 = vmatmul.mubr.msk.f32.vlgmr.msra.gmra.mxu0 %vm548_vm2, %v2330_v32 }
 0x5c3   :  { %4575 = vmatprep.mubr.msk.f32.mxu0 %vm4970_vm1, %v4966_v11  ;;  %4574 = vmatpush3.msra.mxu0 %v2316_v57 }
 0x5c4   :  { %4583 = vmatprep.subr.mxu0 %v4966_v11 }
 0x5c5   :  { %v2942_v38 = vpop.xlane.xlu0 %2941 }
 0x5c6   :  { %v2964_v23 = vsub.f32 %v5368_v1, %v2942_v38 }
 0x5c8   :  { %v2972_v28 = vmul.f32 1.442695, %v2964_v23 }
 0x5c9   :  { %v2951_v25 = vpop.xlane.xlu0 %2950 }
 0x5ca   :  { %v2967_v30 = vsub.f32 %v5372_v7, %v2951_v25  ;;  %4713 = vpow2.f32 %v2972_v28 }
 0x5cc   :  { %v2978_v34 = vmul.f32 1.442695, %v2967_v30  ;;  %v2319_v30 = vld [vmem:[#allocation8 + $0x18] sm:$0xff] }
 0x5d7   :  { %v5446_v46 = vpop.eup %4713 }
 0x5d8   :  { %v2988_v52 = vsel %vm548_vm2, %v5446_v46, 0.0 }
 0x5ef   :  { %v2945_v20 = vpop.xlane.xlu1 %2944 }
 0x5f0   :  { %v2965_v24 = vsub.f32 %v5370_v26, %v2945_v20  ;;  %v2955_v26 = vsel %vm548_vm2, %v5378_v21, -inf }
 0x5f2   :  { %v2974_v33 = vmul.f32 1.442695, %v2965_v24 }
 0x5f4   :  { %4715 = vpow2.f32 %v2974_v33 }
 0x5f5   :  { %4717 = vpow2.f32 %v2978_v34  ;;  %v2321_v34 = vld [vmem:[#allocation8 + $0x28] sm:$0xff] }
 0x601   :  { %v5451_v49 = vpop.eup %4715 }
 0x602   :  { %v2991_v51 = vsel %vm548_vm2, %v5451_v49, 0.0  ;;  %v5457_v53 = vpop.eup %4717 }
 0x603   :  { %v2997_v54 = vsel %vm548_vm2, %v5457_v53, 0.0 }
 0x676   :  { %v5438_v42 = vpop.f32.mrf.mxu0 }
 0x677   :  { %v2266_v38 = vadd.f32 %v5438_v42, %v5087_v8  ;;  %v2318_v42 = vld [vmem:[#allocation8 + $0x10] sm:$0xff] }
 0x678   :  { %v5440_v36 = vpop.f32.mrf.mxu0 }
 0x679   :  { %v2265_v58 = vadd.f32 %v5440_v36, %v5085_v6  ;;  %v2272_v8 = vsel %vm158_vm0, %v2266_v38, 0.0 }
 0x67a   :  { %v2556_v39 = vpop.f32.mrf.mxu0 }
 0x67b   :  { %v2946_v40 = vsel %vm548_vm2, %v2556_v39, -inf  ;;  %v2269_v6 = vsel %vm158_vm0, %v2265_v58, 0.0 }
 0x67c   :  { %2947 = vmax.xlane.f32.xlu0 %v2946_v40  ;;  %v4547_v1 = vpop.f32.mrf.mxu0 }
 0x67e   :  { %v2708_v43 = vpop.f32.mrf.mxu0 }
 0x67f   :  { %v2952_v7 = vsel %vm548_vm2, %v2708_v43, -inf }
 0x680   :  { %2956 = vmax.xlane.f32.xlu0 %v2955_v26  ;;  %2953 = vmax.xlane.f32.xlu1 %v2952_v7  ;;  %v4557_v44 = vpop.f32.mrf.mxu0 }
 0x682   :  { %v2860_v45 = vpop.f32.mrf.mxu0 }
 0x683   :  { %v2958_v48 = vsel %vm548_vm2, %v2860_v45, -inf }
 0x684   :  { %2962 = vmax.xlane.f32.xlu0 %v2961_v47  ;;  %2959 = vmax.xlane.f32.xlu1 %v2958_v48  ;;  %v4567_v50 = vpop.f32.mrf.mxu0 }
 0x688   :  { %2992 = vadd.xlane.f32.xlu0 %v2991_v51  ;;  %2989 = vadd.xlane.f32.xlu1 %v2988_v52 }
 0x68c   :  { %2998 = vadd.xlane.f32.xlu0 %v2997_v54 }
 0x705   :  { %v2948_v60 = vpop.xlane.xlu0 %2947 }
 0x706   :  { %v2966_v61 = vsub.f32 %v2556_v39, %v2948_v60  ;;  %v2322_v60 = vld [vmem:[#allocation8 + $0x30] sm:$0xff] }
 0x708   :  { %v2976_v62 = vmul.f32 1.442695, %v2966_v61 }
 0x709   :  { %v2954_v63 = vpop.xlane.xlu1 %2953  ;;  %v2957_v0 = vpop.xlane.xlu0 %2956 }
 0x70a   :  { %4719 = vpow2.f32 %v2976_v62  ;;  %v2968_v27 = vsub.f32 %v2708_v43, %v2954_v63  ;;  %v2969_v2 = vsub.f32 %v5378_v21, %v2957_v0  ;;  %v2323_v63 = vld [vmem:[#allocation8 + $0x38] sm:$0xff] }
 0x70c   :  { %v2980_v3 = vmul.f32 1.442695, %v2968_v27  ;;  %v2982_v14 = vmul.f32 1.442695, %v2969_v2 }
 0x70d   :  { %v2960_v18 = vpop.xlane.xlu1 %2959  ;;  %v2963_v31 = vpop.xlane.xlu0 %2962 }
 0x70e   :  { %4721 = vpow2.f32 %v2980_v3  ;;  %v2970_v37 = vsub.f32 %v2860_v45, %v2960_v18  ;;  %v2971_v4 = vsub.f32 %v5384_v35, %v2963_v31 }
 0x70f   :  { %4723 = vpow2.f32 %v2982_v14 }
 0x710   :  { %v2984_v5 = vmul.f32 1.442695, %v2970_v37  ;;  %v2986_v9 = vmul.f32 1.442695, %v2971_v4 }
 0x711   :  { %v2990_v10 = vpop.xlane.xlu1 %2989  ;;  %v2993_v12 = vpop.xlane.xlu0 %2992 }
 0x712   :  { %4725 = vpow2.f32 %v2984_v5 }
 0x713   :  { %4727 = vpow2.f32 %v2986_v9 }
 0x714   :  { %4729 = vrcp.f32 %v2990_v10 }
 0x715   :  { %4731 = vrcp.f32 %v2993_v12  ;;  %v2999_v13 = vpop.xlane.xlu0 %2998 }
 0x716   :  { %4733 = vrcp.f32 %v2999_v13 }
 0x717   :  { %v4720_v21 = vpop.eup %4719 }
 0x718   :  { %v2994_v15 = vsel %vm548_vm2, %v4720_v21, 0.0 }
 0x719   :  { %2995 = vadd.xlane.f32.xlu1 %v2994_v15 }
 0x71b   :  { %v5466_v16 = vpop.eup %4721 }
 0x71c   :  { %v5468_v17 = vpop.eup %4723  ;;  %v3000_v35 = vsel %vm548_vm2, %v5466_v16, 0.0 }
 0x71d   :  { %3001 = vadd.xlane.f32.xlu1 %v3000_v35  ;;  %v3003_v19 = vsel %vm548_vm2, %v5468_v17, 0.0 }
 0x71e   :  { %3004 = vadd.xlane.f32.xlu0 %v3003_v19 }
 0x71f   :  { %v5474_v55 = vpop.eup %4725 }
 0x720   :  { %v5476_v56 = vpop.eup %4727  ;;  %v3006_v41 = vsel %vm548_vm2, %v5474_v55, 0.0 }
 0x721   :  { %v4730_v32 = vpop.eup %4729  ;;  %3007 = vadd.xlane.f32.xlu1 %v3006_v41  ;;  %v3009_v20 = vsel %vm548_vm2, %v5476_v56, 0.0 }
 0x722   :  { %v4732_v23 = vpop.eup %4731  ;;  %3010 = vadd.xlane.f32.xlu0 %v3009_v20  ;;  %v3020_v24 = vmul.f32 %v4730_v32, %v5446_v46 }
 0x723   :  { %v4734_v25 = vpop.eup %4733  ;;  %v3021_v28 = vmul.f32 %v4732_v23, %v5451_v49  ;;  %v2320_v49 = vld [vmem:[#allocation8 + $0x20] sm:$0xff] }
 0x724   :  { %4576 = vmatmul.mubr.msk.f32.vlgmr.msra.gmra.mxu0 %vm548_vm2, %v3020_v24  ;;  %v3023_v33 = vmul.f32 %v4734_v25, %v5457_v53 }
 0x725   :  { %4581 = vmatmul.mubr.msk.f32.vlgmr.msra.gmra.mxu1 %vm548_vm2, %v3021_v28  ;;  %2270 = vadd.xlane.f32.xlu1 %v2269_v6 }
 0x726   :  { %2273 = vadd.xlane.f32.xlu0 %v2272_v8  ;;  %4589 = vmatpush3.msra.mxu1 %v2319_v30 }
 0x727   :  { %4590 = vmatprep.mubr.msk.f32.mxu1 %vm4970_vm1, %v4966_v11  ;;  %4585 = vmatprep.mubr.msk.f32.mxu0 %vm4970_vm1, %v4966_v11 }
 0x728   :  { %4598 = vmatprep.subr.mxu1 %v4966_v11  ;;  %4584 = vmatpush3.msra.mxu0 %v2318_v42 }
 0x729   :  { %4591 = vmatmul.mubr.msk.f32.vlgmr.msra.gmra.mxu1 %vm548_vm2, %v3023_v33  ;;  %4593 = vmatprep.subr.mxu0 %v4966_v11 }
 0x72a   :  { %4600 = vmatprep.mubr.msk.f32.mxu1 %vm4970_vm1, %v4966_v11  ;;  %4599 = vmatpush3.msra.mxu1 %v2321_v34 }
 0x72b   :  { %4608 = vmatprep.subr.mxu1 %v4966_v11 }
 0x7a2   :  { %v2996_v36 = vpop.xlane.xlu1 %2995 }
 0x7a3   :  { %4735 = vrcp.f32 %v2996_v36 }
 0x7a6   :  { %v3002_v39 = vpop.xlane.xlu1 %3001 }
 0x7a7   :  { %4737 = vrcp.f32 %v3002_v39  ;;  %v3005_v40 = vpop.xlane.xlu0 %3004 }
 0x7a8   :  { %4739 = vrcp.f32 %v3005_v40 }
 0x7aa   :  { %v3008_v1 = vpop.xlane.xlu1 %3007 }
 0x7ab   :  { %4741 = vrcp.f32 %v3008_v1  ;;  %v3011_v43 = vpop.xlane.xlu0 %3010 }
 0x7ac   :  { %4743 = vrcp.f32 %v3011_v43 }
 0x7ae   :  { %v2271_v26 = vpop.xlane.xlu1 %2270 }
 0x7af   :  { %v2276_v7 = vmul.f32 0.03125, %v2271_v26  ;;  %v2274_v44 = vpop.xlane.xlu0 %2273 }
 0x7b0   :  { %v4736_v45 = vpop.eup %4735  ;;  %v2277_v46 = vmul.f32 0.03125, %v2274_v44 }
 0x7b1   :  { %v5503_v47 = vsub.f32 %v2265_v58, %v2276_v7  ;;  %v3022_v48 = vmul.f32 %v4736_v45, %v4720_v21 }
 0x7b2   :  { %v5505_v50 = vsub.f32 %v2266_v38, %v2277_v46 }
 0x7b3   :  { %4586 = vmatmul.mubr.msk.f32.vlgmr.msra.gmra.mxu0 %vm548_vm2, %v3022_v48  ;;  %v2280_v51 = vmul.f32 %v5503_v47, %v5503_v47 }
 0x7b4   :  { %v4738_v52 = vpop.eup %4737  ;;  %4594 = vmatpush3.msra.mxu0 %v2320_v49  ;;  %4595 = vmatprep.mubr.msk.f32.mxu0 %vm4970_vm1, %v4966_v11  ;;  %v2281_v53 = vmul.f32 %v5505_v50, %v5505_v50 }
 0x7b5   :  { %v4740_v54 = vpop.eup %4739  ;;  %v2282_v57 = vsel %vm158_vm0, %v2280_v51, 0.0  ;;  %v3024_v59 = vmul.f32 %v4738_v52, %v5466_v16  ;;  %4603 = vmatprep.subr.mxu0 %v4966_v11 }
 0x7b6   :  { %2283 = vadd.xlane.f32.xlu1 %v2282_v57  ;;  %v2285_v61 = vsel %vm158_vm0, %v2281_v53, 0.0  ;;  %v3025_v62 = vmul.f32 %v4740_v54, %v5468_v17 }
 0x7b7   :  { %2286 = vadd.xlane.f32.xlu0 %v2285_v61  ;;  %4596 = vmatmul.mubr.msk.f32.vlgmr.msra.gmra.mxu0 %vm548_vm2, %v3024_v59 }
 0x7b8   :  { %v4742_v0 = vpop.eup %4741  ;;  %4601 = vmatmul.mubr.msk.f32.vlgmr.msra.gmra.mxu1 %vm548_vm2, %v3025_v62  ;;  %4604 = vmatpush3.msra.mxu0 %v2322_v60 }
 0x7b9   :  { %v4744_v27 = vpop.eup %4743  ;;  %4609 = vmatpush3.msra.mxu1 %v2323_v63  ;;  %4605 = vmatprep.mubr.msk.f32.mxu0 %vm4970_vm1, %v4966_v11  ;;  %v3026_v2 = vmul.f32 %v4742_v0, %v5474_v55 }
 0x7ba   :  { %4610 = vmatprep.mubr.msk.f32.mxu1 %vm4970_vm1, %v4966_v11  ;;  %v3027_v3 = vmul.f32 %v4744_v27, %v5476_v56 }
 0x7bb   :  { %4606 = vmatmul.mubr.msk.f32.vlgmr.msra.gmra.mxu0 %vm548_vm2, %v3026_v2 }
 0x7bc   :  { %4611 = vmatmul.mubr.msk.f32.vlgmr.msra.gmra.mxu1 %vm548_vm2, %v3027_v3 }
 0x7e4   :  { %v3097_v14 = vpop.f32.mrf.mxu0 }
 0x7e5   :  { %v3170_v18 = vpop.f32.mrf.mxu1 }
 0x7e6   :  { %v4577_v31 = vpop.f32.mrf.mxu0 }
 0x7e7   :  { %v4582_v37 = vpop.f32.mrf.mxu1 }
 0x7e9   :  { %v3316_v4 = vpop.f32.mrf.mxu1 }
 0x7ea   :  { %v3628_v5 = vcombine.low %v3170_v18, %v3316_v4  ;;  %v3629_v9 = vcombine.high %v3170_v18, %v3316_v4 }
 0x7eb   :  { %v4592_v10 = vpop.f32.mrf.mxu1 }
 0x7ec   :  { %v3636_v11 = vrot.slane %v3628_v5, %v5099_v22  ;;  %v3643_v16 = vrot.slane %v3629_v9, %v5099_v22 }
 0x873   :  { %v3243_v12 = vpop.f32.mrf.mxu0 }
 0x874   :  { %v3612_v13 = vcombine.low %v3097_v14, %v3243_v12  ;;  %v3613_v21 = vcombine.high %v3097_v14, %v3243_v12 }
 0x875   :  { %v4587_v15 = vpop.f32.mrf.mxu0 }
 0x876   :  { %v3620_v17 = vrot.slane %v3612_v13, %v5099_v22  ;;  %v3627_v35 = vrot.slane %v3613_v21, %v5099_v22 }
 0x877   :  { %v3389_v19 = vpop.f32.mrf.mxu0 }
 0x878   :  { %v3644_v55 = vcombine.low %v3620_v17, %v3636_v11  ;;  %v3645_v56 = vcombine.high %v3620_v17, %v3636_v11  ;;  %v3660_v58 = vcombine.low %v3627_v35, %v3643_v16  ;;  %v3661_v41 = vcombine.high %v3627_v35, %v3643_v16  ;;  %v3462_v32 = vpop.f32.mrf.mxu1 }
 0x879   :  { %v4597_v38 = vpop.f32.mrf.mxu0 }
 0x87a   :  { %v3652_v20 = vrot.slane %v3644_v55, %v5102_v29  ;;  %v3659_v23 = vrot.slane %v3645_v56, %v5102_v29  ;;  %v3668_v24 = vrot.slane %v3660_v58, %v5102_v29  ;;  %v3675_v25 = vrot.slane %v3661_v41, %v5102_v29  ;;  %v4602_v28 = vpop.f32.mrf.mxu1 }
 0x87b   :  { %v3535_v30 = vpop.f32.mrf.mxu0  ;;  %v2284_v28 = vpop.xlane.xlu1 %2283 }
 0x87c   :  { %v3680_v6 = vcombine.low %v3389_v19, %v3535_v30  ;;  %v3681_v8 = vcombine.high %v3389_v19, %v3535_v30  ;;  %v3608_v33 = vpop.f32.mrf.mxu1  ;;  %v3748_v42 = vcombine.low %v3652_v20, %v3659_v23  ;;  %v4317_v34 = vcombine.high %v3652_v20, %v3659_v23  ;;  %v2287_v30 = vpop.xlane.xlu0 %2286 }
 0x87d   :  { %v3696_v36 = vcombine.low %v3462_v32, %v3608_v33  ;;  %v3697_v39 = vcombine.high %v3462_v32, %v3608_v33  ;;  %v4607_v40 = vpop.f32.mrf.mxu0  ;;  %v3764_v1 = vcombine.low %v3668_v24, %v3675_v25  ;;  %v4318_v43 = vcombine.high %v3668_v24, %v3675_v25 }
 0x87e   :  { %v3688_v26 = vrot.slane %v3680_v6, %v5099_v22  ;;  %v3695_v7 = vrot.slane %v3681_v8, %v5099_v22  ;;  %v4612_v44 = vpop.f32.mrf.mxu1  ;;  %v3755_v45 = vrot.slane %v3748_v42, %v5099_v22  ;;  %v3763_v46 = vrot.slane %v4317_v34, %v5099_v22 }
 0x87f   :  { %v3704_v48 = vrot.slane %v3696_v36, %v5099_v22  ;;  %v3711_v49 = vrot.slane %v3697_v39, %v5099_v22  ;;  %v3771_v51 = vrot.slane %v3764_v1, %v5099_v22  ;;  %v3779_v52 = vrot.slane %v4318_v43, %v5099_v22  ;;  %v4291_v1 = vld [vmem:[%s5656_s10] ss:$0 sm:$0xff] }
 0x880   :  { %v3780_v53 = vcombine.low %v3755_v45, %v3763_v46  ;;  %v3781_v54 = vcombine.high %v3755_v45, %v3763_v46  ;;  %v2288_v6 = vmul.f32 0.03125, %v2284_v28  ;;  %v2289_v8 = vmul.f32 0.03125, %v2287_v30  ;;  %v4292_v45 = vld [vmem:[%s5657_s11] ss:$0 sm:$0xff] }
 0x881   :  { %v3712_v57 = vcombine.low %v3688_v26, %v3704_v48  ;;  %v3713_v59 = vcombine.high %v3688_v26, %v3704_v48  ;;  %v3728_v60 = vcombine.low %v3695_v7, %v3711_v49  ;;  %v3729_v61 = vcombine.high %v3695_v7, %v3711_v49 }
 0x882   :  { %v5546_v62 = vrot.slane %v3780_v53, %v5102_v29  ;;  %v3796_v63 = vcombine.low %v3771_v51, %v3779_v52  ;;  %v3795_v0 = vrot.slane %v3781_v54, %v5102_v29  ;;  %v3797_v27 = vcombine.high %v3771_v51, %v3779_v52 }
 0x883   :  { %v3720_v2 = vrot.slane %v3712_v57, %v5102_v29  ;;  %v3727_v3 = vrot.slane %v3713_v59, %v5102_v29  ;;  %v3736_v14 = vrot.slane %v3728_v60, %v5102_v29  ;;  %v3743_v18 = vrot.slane %v3729_v61, %v5102_v29 }
 0x884   :  { %v3804_v31 = vrot.slane %v3796_v63, %v5102_v29  ;;  %v3811_v37 = vrot.slane %v3797_v27, %v5102_v29  ;;  %v2290_v33 = vadd.f32 1e-05, %v2288_v6  ;;  %v4321_v6 = vld [vmem:[%s5656_s10 + $0x1] ss:$0 sm:$0xff] }
 0x885   :  { %v3816_v4 = vcombine.low %v3720_v2, %v3727_v3  ;;  %v4319_v5 = vcombine.high %v3720_v2, %v3727_v3  ;;  %v3832_v9 = vcombine.low %v3736_v14, %v3743_v18  ;;  %v4320_v10 = vcombine.high %v3736_v14, %v3743_v18 }
 0x886   :  { %v3813_v12 = vcombine.high %v5546_v62, %v3804_v31  ;;  %v3812_v13 = vcombine.low %v5546_v62, %v3804_v31  ;;  %v3814_v21 = vcombine.low %v3795_v0, %v3811_v37  ;;  %v3815_v15 = vcombine.high %v3795_v0, %v3811_v37 }
 0x887   :  { %v3823_v11 = vrot.slane %v3816_v4, %v5099_v22  ;;  %v3831_v16 = vrot.slane %v4319_v5, %v5099_v22  ;;  %v3839_v17 = vrot.slane %v3832_v9, %v5099_v22  ;;  %v3847_v35 = vrot.slane %v4320_v10, %v5099_v22  ;;  %v3959_v9 = vld [vmem:[#allocation13 + $0x18] sm:$0xff]  ;;  %v3958_v10 = vld [vmem:[#allocation13 + $0x10] sm:$0xff] }
 0x888   :  { %3886 = vrot.lane.b32.xlu1 %v3813_v12, %s4957_s14  ;;  %4745 = vrsqrt.f32 %v2290_v33  ;;  %4613 = vmatprep.subr.mxu0 %v3959_v9  ;;  %v3957_v12 = vld [vmem:[#allocation13 + $0x8] sm:$0xff] }
 0x889   :  { %v3849_v19 = vcombine.high %v3823_v11, %v3831_v16  ;;  %v3865_v55 = vcombine.high %v3839_v17, %v3847_v35  ;;  %v3848_v56 = vcombine.low %v3823_v11, %v3831_v16  ;;  %v3864_v58 = vcombine.low %v3839_v17, %v3847_v35  ;;  %4614 = vmatpush3.msra.mxu0 %v3959_v9  ;;  %v4061_v11 = vld [vmem:[#allocation14 + $0x68] sm:$0xff]  ;;  %v4060_v16 = vld [vmem:[#allocation14 + $0x60] sm:$0xff]  ;;  %v4059_v17 = vld [vmem:[#allocation14 + $0x58] sm:$0xff] }
 0x88a   :  { %4615 = vmatprep.subr.mxu0 %v3958_v10  ;;  %v4058_v35 = vld [vmem:[#allocation14 + $0x50] sm:$0xff]  ;;  %v4322_v33 = vld [vmem:[%s5657_s11 + $0x1] ss:$0 sm:$0xff] }
 0x88b   :  { %v3863_v41 = vrot.slane %v3849_v19, %v5102_v29  ;;  %v3879_v32 = vrot.slane %v3865_v55, %v5102_v29  ;;  %v3856_v38 = vrot.slane %v3848_v56, %v5102_v29  ;;  %v3872_v20 = vrot.slane %v3864_v58, %v5102_v29  ;;  %4616 = vmatpush3.msra.mxu0 %v3958_v10  ;;  %v4057_v19 = vld [vmem:[#allocation14 + $0x48] sm:$0xff]  ;;  %v4056_v55 = vld [vmem:[#allocation14 + $0x40] sm:$0xff]  ;;  %v4055_v56 = vld [vmem:[#allocation14 + $0x38] sm:$0xff] }
 0x88c   :  { %3894 = vrot.lane.b32.xlu1 %v3814_v21, %s4972_s24  ;;  %v2291_v29 = vadd.f32 1e-05, %v2289_v8  ;;  %4617 = vmatprep.subr.mxu0 %v3957_v12  ;;  %v4063_v21 = vld [vmem:[#allocation14 + $0x78] sm:$0xff]  ;;  %v4054_v58 = vld [vmem:[#allocation14 + $0x30] sm:$0xff] }
 0x88d   :  { %v3882_v23 = vcombine.low %v3863_v41, %v3879_v32  ;;  %v3880_v24 = vcombine.low %v3856_v38, %v3872_v20  ;;  %v3881_v25 = vcombine.high %v3856_v38, %v3872_v20  ;;  %v3883_v22 = vcombine.high %v3863_v41, %v3879_v32  ;;  %4618 = vmatpush3.msra.mxu0 %v3957_v12  ;;  %v4053_v41 = vld [vmem:[#allocation14 + $0x28] sm:$0xff]  ;;  %v4052_v32 = vld [vmem:[#allocation14 + $0x20] sm:$0xff]  ;;  %v4051_v38 = vld [vmem:[#allocation14 + $0x18] sm:$0xff] }
 0x88e   :  { %4747 = vrsqrt.f32 %v2291_v29  ;;  %4624 = vmatprep.subr.mxu1 %v4063_v21 }
 0x88f   :  { %3888 = vrot.lane.b32.xlu0 %v3881_v25, %s4957_s14  ;;  %4625 = vmatpush3.msra.mxu1 %v4063_v21 }
 0x890   :  { %3896 = vrot.lane.b32.xlu1 %v3882_v23, %s4972_s24 }
 0x893   :  { %3902 = vrot.lane.b32.xlu0 %v3815_v15, %s4973_s5  ;;  %v4062_v15 = vld [vmem:[#allocation14 + $0x70] sm:$0xff] }
 0x894   :  { %3904 = vrot.lane.b32.xlu1 %v3883_v22, %s4973_s5  ;;  %4626 = vmatprep.subr.mxu1 %v4062_v15 }
 0x895   :  { %v4746_v42 = vpop.eup %4745  ;;  %4627 = vmatpush3.msra.mxu1 %v4062_v15  ;;  %v4327_v15 = vld [vmem:[%s5656_s10 + $0x2] ss:$0 sm:$0xff] }
 0x896   :  { %v2294_v39 = vmul.f32 %v4746_v42, %v5503_v47  ;;  %4628 = vmatprep.subr.mxu1 %v4061_v11 }
 0x897   :  { %4629 = vmatpush3.msra.mxu1 %v4061_v11 }
 0x898   :  { %v2300_v7 = vmul.f32 %v4291_v1, %v2294_v39  ;;  %4630 = vmatprep.subr.mxu1 %v4060_v16 }
 0x899   :  { %4631 = vmatpush3.msra.mxu1 %v4060_v16 }
 0x89a   :  { %v2306_v52 = vadd.f32 %v4292_v45, %v2300_v7  ;;  %4632 = vmatprep.subr.mxu1 %v4059_v17 }
 0x89b   :  { %v4748_v36 = vpop.eup %4747  ;;  %4633 = vmatpush3.msra.mxu1 %v4059_v17  ;;  %v4328_v17 = vld [vmem:[%s5657_s11 + $0x2] ss:$0 sm:$0xff] }
 0x89c   :  { %v2295_v43 = vmul.f32 %v4748_v36, %v5505_v50  ;;  %4634 = vmatprep.subr.mxu1 %v4058_v35 }
 0x89d   :  { %4635 = vmatpush3.msra.mxu1 %v4058_v35 }
 0x89e   :  { %v2301_v46 = vmul.f32 %v4291_v1, %v2295_v43  ;;  %4636 = vmatprep.subr.mxu1 %v4057_v19  ;;  %v4050_v1 = vld [vmem:[#allocation14 + $0x10] sm:$0xff]  ;;  %v4049_v43 = vld [vmem:[#allocation14 + $0x8] sm:$0xff] }
 0x89f   :  { %4637 = vmatpush3.msra.mxu1 %v4057_v19 }
 0x8a0   :  { %v2307_v57 = vadd.f32 %v4292_v45, %v2301_v46  ;;  %4638 = vmatprep.subr.mxu1 %v4056_v55 }
 0x8a1   :  { %4639 = vmatpush3.msra.mxu1 %v4056_v55 }
 0x8a2   :  { %4640 = vmatprep.subr.mxu1 %v4055_v56 }
 0x8a3   :  { %4641 = vmatpush3.msra.mxu1 %v4055_v56 }
 0x8a4   :  { %4642 = vmatprep.subr.mxu1 %v4054_v58 }
 0x8a5   :  { %4643 = vmatpush3.msra.mxu1 %v4054_v58 }
 0x8a6   :  { %4644 = vmatprep.subr.mxu1 %v4053_v41 }
 0x8a7   :  { %4645 = vmatpush3.msra.mxu1 %v4053_v41 }
 0x8a8   :  { %4646 = vmatprep.subr.mxu1 %v4052_v32 }
 0x8a9   :  { %4647 = vmatpush3.msra.mxu1 %v4052_v32 }
 0x8aa   :  { %4648 = vmatprep.subr.mxu1 %v4051_v38 }
 0x8ab   :  { %4649 = vmatpush3.msra.mxu1 %v4051_v38 }
 0x8ac   :  { %4650 = vmatprep.subr.mxu1 %v4050_v1 }
 0x8ad   :  { %4651 = vmatpush3.msra.mxu1 %v4050_v1 }
 0x8ae   :  { %4652 = vmatprep.subr.mxu1 %v4049_v43 }
 0x8af   :  { %4653 = vmatpush3.msra.mxu1 %v4049_v43 }
 0x8fa   :  { %v3887_v34 = vpop.permute.xlu1 %3886 }
 0x8fb   :  { %v3908_v49 = vsel %vm548_vm2, %v3812_v13, %v3887_v34  ;;  %v3956_v13 = vld [vmem:[#allocation13] sm:$0xff] }
 0x8fc   :  { %4619 = vmatprep.subr.mxu0 %v3956_v13 }
 0x8fd   :  { %4620 = vmatpush3.msra.mxu0 %v3956_v13 }
 0x8fe   :  { %v3895_v40 = vpop.permute.xlu1 %3894 }
 0x8ff   :  { %v3910_v47 = vsel %vm2174_vm4, %v3908_v49, %v3895_v40  ;;  %v4326_v49 = vld [vmem:[%s5655_s9] ss:$0 sm:$0xff] }
 0x901   :  { %v3889_v26 = vpop.permute.xlu0 %3888 }
 0x902   :  { %v3897_v44 = vpop.permute.xlu1 %3896  ;;  %v3909_v48 = vsel %vm548_vm2, %v3880_v24, %v3889_v26  ;;  %v4048_v26 = vld [vmem:[#allocation14] sm:$0xff] }
 0x903   :  { %v3911_v54 = vsel %vm2174_vm4, %v3909_v48, %v3897_v44  ;;  %4654 = vmatprep.subr.mxu1 %v4048_v26  ;;  %v4323_v44 = vld [vmem:[%s5653_s7] ss:$0 sm:$0xff] }
 0x904   :  { %4655 = vmatpush3.msra.mxu1 %v4048_v26  ;;  %v4329_v26 = vld [vmem:[%s5656_s10 + $0x3] ss:$0 sm:$0xff] }
 0x905   :  { %v3903_v51 = vpop.permute.xlu0 %3902 }
 0x906   :  { %v3905_v53 = vpop.permute.xlu1 %3904  ;;  %v3912_v50 = vsel %vm2177_vm5, %v3910_v47, %v3903_v51 }
 0x907   :  { %v3913_v59 = vsel %vm2177_vm5, %v3911_v54, %v3905_v53  ;;  %v3914_v60 = vadd.f32 %v3912_v50, %v2306_v52 }
 0x908   :  { %v3915_v61 = vadd.f32 %v3913_v59, %v2307_v57 }
 0x909   :  { %v3918_v62 = vsel %vm158_vm0, %v3914_v60, 0.0 }
 0x90a   :  { %v3921_v63 = vsel %vm158_vm0, %v3915_v61, 0.0  ;;  %3919 = vadd.xlane.f32.xlu0 %v3918_v62 }
 0x90b   :  { %3922 = vadd.xlane.f32.xlu1 %v3921_v63 }
 0x993   :  { %v3920_v0 = vpop.xlane.xlu0 %3919 }
 0x994   :  { %v3923_v27 = vpop.xlane.xlu1 %3922  ;;  %v3924_v2 = vmul.f32 0.03125, %v3920_v0 }
 0x995   :  { %v3925_v3 = vmul.f32 0.03125, %v3923_v27 }
 0x996   :  { %v5587_v14 = vsub.f32 %v3914_v60, %v3924_v2 }
 0x997   :  { %v5589_v18 = vsub.f32 %v3915_v61, %v3925_v3 }
 0x998   :  { %v3928_v31 = vmul.f32 %v5587_v14, %v5587_v14 }
 0x999   :  { %v3929_v4 = vmul.f32 %v5589_v18, %v5589_v18 }
 0x99a   :  { %v3930_v37 = vsel %vm158_vm0, %v3928_v31, 0.0 }
 0x99b   :  { %3931 = vadd.xlane.f32.xlu0 %v3930_v37  ;;  %v3933_v5 = vsel %vm158_vm0, %v3929_v4, 0.0 }
 0x99f   :  { %3934 = vadd.xlane.f32.xlu0 %v3933_v5 }
 0xa24   :  { %v3932_v20 = vpop.xlane.xlu0 %3931 }
 0xa25   :  { %v3936_v23 = vmul.f32 0.03125, %v3932_v20 }
 0xa27   :  { %v3938_v24 = vadd.f32 1e-05, %v3936_v23 }
 0xa28   :  { %v3935_v25 = vpop.xlane.xlu0 %3934 }
 0xa29   :  { %4749 = vrsqrt.f32 %v3938_v24  ;;  %v3937_v22 = vmul.f32 0.03125, %v3935_v25 }
 0xa2b   :  { %v3939_v28 = vadd.f32 1e-05, %v3937_v22 }
 0xa2d   :  { %4751 = vrsqrt.f32 %v3939_v28 }
 0xa36   :  { %v4750_v30 = vpop.eup %4749 }
 0xa37   :  { %v3942_v8 = vmul.f32 %v4750_v30, %v5587_v14 }
 0xa39   :  { %v3948_v29 = vmul.f32 %v4321_v6, %v3942_v8 }
 0xa3a   :  { %v4752_v42 = vpop.eup %4751 }
 0xa3b   :  { %v3943_v34 = vmul.f32 %v4752_v42, %v5589_v18  ;;  %v5605_v36 = vadd.f32 %v4322_v33, %v3948_v29 }
 0xa3d   :  { %v3949_v39 = vmul.f32 %v4321_v6, %v3943_v34  ;;  %4621 = vmatprep.mubr.msk.f32.mxu0 %vm158_vm0, %v5605_v36 }
 0xa3f   :  { %v3955_v40 = vadd.f32 %v4322_v33, %v3949_v39 }
 0xa41   :  { %4622 = vmatmul.mubr.msk.f32.vlgmr.msra.gmra.mxu0 %vm158_vm0, %v3955_v40 }
 0xb01   :  { %v4623_v7 = vpop.f32.mrf.mxu0 }
 0xb02   :  { %v4045_v48 = vadd.f32 %v4623_v7, %v4323_v44 }
 0xb03   :  { %v4039_v45 = vpop.f32.mrf.mxu0 }
 0xb04   :  { %v4040_v46 = vadd.f32 %v4323_v44, %v4039_v45  ;;  %v4330_v45 = vld [vmem:[%s5657_s11 + $0x3] ss:$0 sm:$0xff] }
 0xb06   :  { %4656 = vmatprep.mubr.f32.mxu1 %v4040_v46 }
 0xb07   :  { %4657 = vmatmul.mubr.f32.vlgmr.msra.gmra.mxu1 %v4045_v48 }
 0xbc7   :  { %v4658_v47 = vpop.f32.mrf.mxu1 }
 0xbc8   :  { %v4143_v51 = vadd.f32 %v4658_v47, %v4326_v49 }
 0xbc9   :  { %v4137_v52 = vpop.f32.mrf.mxu1 }
 0xbca   :  { %v4147_v53 = vmax.f32 %v4143_v51, 0.0  ;;  %v4138_v54 = vadd.f32 %v4326_v49, %v4137_v52 }
 0xbcc   :  { %v4146_v50 = vmax.f32 %v4138_v54, 0.0  ;;  %v4149_v57 = vadd.f32 %v4147_v53, %v3955_v40 }
 0xbce   :  { %v4155_v59 = vsel %vm158_vm0, %v4149_v57, 0.0  ;;  %v4148_v60 = vadd.f32 %v4146_v50, %v5605_v36 }
 0xbcf   :  { %4156 = vadd.xlane.f32.xlu0 %v4155_v59 }
 0xbd0   :  { %v4152_v61 = vsel %vm158_vm0, %v4148_v60, 0.0 }
 0xbd1   :  { %4153 = vadd.xlane.f32.xlu1 %v4152_v61 }
 0xc58   :  { %v4157_v62 = vpop.xlane.xlu0 %4156 }
 0xc59   :  { %v4159_v63 = vmul.f32 0.03125, %v4157_v62 }
 0xc5a   :  { %v4154_v0 = vpop.xlane.xlu1 %4153 }
 0xc5b   :  { %v4161_v27 = vsub.f32 %v4149_v57, %v4159_v63  ;;  %v4158_v2 = vmul.f32 0.03125, %v4154_v0 }
 0xc5d   :  { %v4160_v3 = vsub.f32 %v4148_v60, %v4158_v2  ;;  %v4163_v14 = vmul.f32 %v4161_v27, %v4161_v27 }
 0xc5f   :  { %v4167_v18 = vsel %vm158_vm0, %v4163_v14, 0.0  ;;  %v4162_v31 = vmul.f32 %v4160_v3, %v4160_v3 }
 0xc60   :  { %4168 = vadd.xlane.f32.xlu0 %v4167_v18 }
 0xc61   :  { %v4164_v37 = vsel %vm158_vm0, %v4162_v31, 0.0 }
 0xc62   :  { %4165 = vadd.xlane.f32.xlu1 %v4164_v37 }
 0xce9   :  { %v4169_v4 = vpop.xlane.xlu0 %4168 }
 0xcea   :  { %v4171_v5 = vmul.f32 0.03125, %v4169_v4 }
 0xceb   :  { %v4166_v9 = vpop.xlane.xlu1 %4165 }
 0xcec   :  { %v4173_v10 = vadd.f32 1e-05, %v4171_v5  ;;  %v4170_v12 = vmul.f32 0.03125, %v4166_v9 }
 0xcee   :  { %4753 = vrsqrt.f32 %v4173_v10  ;;  %v4172_v13 = vadd.f32 1e-05, %v4170_v12 }
 0xcf0   :  { %4755 = vrsqrt.f32 %v4172_v13 }
 0xcfb   :  { %v4754_v21 = vpop.eup %4753 }
 0xcfc   :  { %v4177_v11 = vmul.f32 %v4754_v21, %v4161_v27 }
 0xcfd   :  { %v4756_v16 = vpop.eup %4755 }
 0xcfe   :  { %v4183_v35 = vmul.f32 %v4327_v15, %v4177_v11  ;;  %v4176_v19 = vmul.f32 %v4756_v16, %v4160_v3 }
 0xd00   :  { %v4189_v55 = vadd.f32 %v4328_v17, %v4183_v35  ;;  %v4182_v56 = vmul.f32 %v4327_v15, %v4176_v19 }
 0xd02   :  { %v4191_v58 = vadd.f32 %v4189_v55, %v3955_v40  ;;  %v4188_v41 = vadd.f32 %v4328_v17, %v4182_v56 }
 0xd04   :  { %v4197_v32 = vsel %vm158_vm0, %v4191_v58, 0.0  ;;  %v4190_v38 = vadd.f32 %v4188_v41, %v5605_v36 }
 0xd05   :  { %4198 = vadd.xlane.f32.xlu0 %v4197_v32 }
 0xd06   :  { %v4194_v20 = vsel %vm158_vm0, %v4190_v38, 0.0 }
 0xd07   :  { %4195 = vadd.xlane.f32.xlu1 %v4194_v20 }
 0xd8e   :  { %v4199_v23 = vpop.xlane.xlu0 %4198 }
 0xd8f   :  { %v4201_v24 = vmul.f32 0.03125, %v4199_v23 }
 0xd90   :  { %v4196_v25 = vpop.xlane.xlu1 %4195 }
 0xd91   :  { %v4203_v22 = vsub.f32 %v4191_v58, %v4201_v24  ;;  %v4200_v28 = vmul.f32 0.03125, %v4196_v25 }
 0xd93   :  { %v4202_v30 = vsub.f32 %v4190_v38, %v4200_v28  ;;  %v4205_v6 = vmul.f32 %v4203_v22, %v4203_v22 }
 0xd95   :  { %v4209_v8 = vsel %vm158_vm0, %v4205_v6, 0.0  ;;  %v4204_v33 = vmul.f32 %v4202_v30, %v4202_v30 }
 0xd96   :  { %4210 = vadd.xlane.f32.xlu0 %v4209_v8 }
 0xd97   :  { %v4206_v29 = vsel %vm158_vm0, %v4204_v33, 0.0 }
 0xd98   :  { %4207 = vadd.xlane.f32.xlu1 %v4206_v29 }
 0xe1f   :  { %v4211_v42 = vpop.xlane.xlu0 %4210 }
 0xe20   :  { %v4213_v34 = vmul.f32 0.03125, %v4211_v42 }
 0xe21   :  { %v4208_v36 = vpop.xlane.xlu1 %4207 }
 0xe22   :  { %v4215_v39 = vadd.f32 1e-05, %v4213_v34  ;;  %v4212_v40 = vmul.f32 0.03125, %v4208_v36 }
 0xe24   :  { %4757 = vrsqrt.f32 %v4215_v39  ;;  %v4214_v1 = vadd.f32 1e-05, %v4212_v40 }
 0xe26   :  { %4759 = vrsqrt.f32 %v4214_v1 }
 0xe31   :  { %v4758_v43 = vpop.eup %4757 }
 0xe32   :  { %v4219_v7 = vmul.f32 %v4758_v43, %v4203_v22 }
 0xe33   :  { %v4760_v44 = vpop.eup %4759 }
 0xe34   :  { %v4218_v46 = vmul.f32 %v4760_v44, %v4202_v30  ;;  %v4225_v48 = vmul.f32 %v4329_v26, %v4219_v7 }
 0xe36   :  { %v4224_v49 = vmul.f32 %v4329_v26, %v4218_v46  ;;  %v4231_v47 = vadd.f32 %v4330_v45, %v4225_v48 }
 0xe38   :  { %v4230_v51 = vadd.f32 %v4330_v45, %v4224_v49  ;;  %4233 = vst.msk [vmem:[#allocation16 + $0x8] sm:$0xff] %vm158_vm0, %v4231_v47 }
 0xe3a   :  { %4232 = vst.msk [vmem:[#allocation16] sm:$0xff] %vm158_vm0, %v4230_v51 }
 0xe3b   :  { %4932 = shalt.err (!%p4929_p2)
}
 0xe3c   :  { %4245 = dma.vmem_to_hbm [thread:$0]  %s4240_s3, 256, %s5658_s12, [#allocation4], %s4956_s13, %s4956_s13, %s4957_s14  }
 0xe3d   :  { %4951 = dma.done.wait [#allocation4], 256  }
 0xe3e   :  { %4952 = vsyncadd [#allocation4], 4294967040 }
 0xe3f   :  { %4249 = vsyncpa [#allocation3], 1 }
 0xe40   :  { %4250 = vsyncpa [#allocation6], 1 }
 0xe41   :  { %4251 = vsyncpa [#allocation9], 1 }
 0xe42   :  { %4252 = vsyncpa [#allocation12], 1 }
 0xe43   :  { %4253 = vsyncpa [#allocation15], 1 }
 0xe44   :  { %4254 = vsyncpa [#allocation4], 1 }

</bundles_post_ra>
